<compile_context>
chip_gen: v6e
topology: v6e:2x2x1
jax: 0.10.0
libtpu: 0.0.40
codegen_flags: <defaults>
</compile_context>

<pallas_src>
import jax
import jax.numpy as jnp
import numpy as np
from jax.experimental import pallas as pl
from jax.experimental.pallas import tpu as pltpu

# ----- small synthetic config (matches module hyper-parameter roles) -----
B, T = 8, 8
ITEM_NUM = 128     # item vocab V
USER_NUM = 16      # unused by forward (user_id ignored)
E = 32             # num_item_units
H = 32             # num_gru_units == hidden_size
TOPK = 10          # recommendation_len


# --------------------------- fused Pallas kernel -----------------------------
def gru_fused_kernel(ids_ref, lens_ref, emb_ref, emb_t_ref, w_i3_ref, w_h3_ref,
                     b_gx_ref, b_hn_ref, w_p_ref, b_p_ref,
                     logits_ref, h_ref, gx_scr):
    """Embedding gather -> GRU recurrence -> hidden_to_item -> vocab logits."""
    # ---- in-kernel embedding lookup: one-hot(ids) @ emb on the MXU ----
    ids = ids_ref[...]                                               # (T*B, 1) i32
    iota_v = jax.lax.broadcasted_iota(jnp.int32, (T * B, ITEM_NUM), 1)
    onehot = (ids == iota_v).astype(jnp.bfloat16)                    # (T*B, V)
    x = jnp.dot(onehot, emb_ref[...],                                # (T*B, E) f32
                preferred_element_type=jnp.float32)

    # ---- hoisted input projection: single (T*B,E)x(E,3H) matmul, staged in VMEM ----
    # columns are [r | z | n]; r/z biases are pre-folded (b_ir+b_hr, b_iz+b_hz), n
    # keeps b_in here and b_hn inside the r*(.) term below.
    gx_scr[...] = (jnp.dot(x.astype(jnp.bfloat16), w_i3_ref[...],
                           preferred_element_type=jnp.float32)
                   + b_gx_ref[...])

    w_h3 = w_h3_ref[...]                                             # (H, 3H) bf16
    b_hn = b_hn_ref[...]                                             # (1, H)  f32
    lens = lens_ref[...]                                             # (B, 1)  i32

    # Fully unrolled recurrence (T static & small); h stays in vregs, gx reloaded
    # per step from scratch so its live range does not span the whole loop.
    h = jnp.zeros((B, H), jnp.float32)
    for t in range(T):
        gx_t = gx_scr[pl.ds(t * B, B), :]                            # (B, 3H) f32
        gh = jnp.dot(h.astype(jnp.bfloat16), w_h3,                   # 1 MXU push/step
                     preferred_element_type=jnp.float32)             # (B, 3H) f32
        rz = jax.nn.sigmoid(gx_t[:, :2 * H] + gh[:, :2 * H])         # (B, 2H)
        r = rz[:, :H]
        z = rz[:, H:]
        n = jnp.tanh(gx_t[:, 2 * H:] + r * (gh[:, 2 * H:] + b_hn))
        h_new = (1.0 - z) * n + z * h
        # pack_padded_sequence semantics: only advance h while t < length[b]
        # (exact select, not an arithmetic blend).
        h = jnp.where(lens > t, h_new, h)

    h_ref[...] = h                                                   # (8,32) masked store, intentional

    # ---- head: hidden -> global_preference -> vocab logits (canonical (B,E)@(E,V)) ----
    pref = (jnp.dot(h.astype(jnp.bfloat16), w_p_ref[...],
                    preferred_element_type=jnp.float32) + b_p_ref[...])
    logits_ref[...] = jnp.dot(pref.astype(jnp.bfloat16), emb_t_ref[...],
                              preferred_element_type=jnp.float32)


# --------------------------- pallas_call wrapper ------------------------------
def run_fused(ids_tm, lens, emb_bf, emb_t_bf, w_i3, w_h3, b_gx, b_hn, w_p, b_p):
    inputs = (ids_tm, lens, emb_bf, emb_t_bf, w_i3, w_h3, b_gx, b_hn, w_p, b_p)
    # every operand/output is a single full-array block (tiny shapes, grid=(1,))
    in_specs = [pl.BlockSpec(a.shape, lambda i: (0, 0)) for a in inputs]
    out_specs = [pl.BlockSpec((B, ITEM_NUM), lambda i: (0, 0)),
                 pl.BlockSpec((B, H), lambda i: (0, 0))]
    return pl.pallas_call(
        gru_fused_kernel,
        out_shape=(jax.ShapeDtypeStruct((B, ITEM_NUM), jnp.float32),
                   jax.ShapeDtypeStruct((B, H), jnp.float32)),
        grid_spec=pltpu.PrefetchScalarGridSpec(
            num_scalar_prefetch=0,
            grid=(1,),
            in_specs=in_specs,
            out_specs=out_specs,
            scratch_shapes=[pltpu.VMEM((T * B, 3 * H), jnp.float32)],  # staged gx
        ),
        compiler_params=pltpu.CompilerParams(dimension_semantics=("arbitrary",)),
    )(*inputs)


@jax.jit
def gru_forward(params, item_x, user_id=None):
    """Pallas implementation of GRU.forward (inference: dropout(p=0.1) is identity)."""
    del user_id  # unused by the reference forward pass
    lengths = jnp.sum((item_x != 0).astype(jnp.int32), axis=-1)           # (B,)
    # time-major flat id vector (an (8,8) int transpose; negligible, fused in jit)
    ids_tm = jnp.transpose(item_x, (1, 0)).reshape(T * B, 1).astype(jnp.int32)

    logits, h_final = run_fused(
        ids_tm, lengths.reshape(B, 1).astype(jnp.int32),
        params["emb_bf"], params["emb_t_bf"],
        params["w_i3"], params["w_h3"],
        params["b_gx"], params["b_hn"],
        params["w_p_bf"], params["b_proj"])

    # TODO(synk): torch.topk has no Pallas primitive; softmax is monotone so top-k
    # on the raw logits (plain JAX) yields identical preds.
    _, preds = jax.lax.top_k(logits, TOPK)
    return preds, logits, h_final


# --------------------------- params & references ---------------------------
def init_params(key):
    ks = jax.random.split(key, 7)
    k_h = 1.0 / np.sqrt(H)
    emb = jax.random.normal(ks[0], (ITEM_NUM, E), jnp.float32)
    emb = emb.at[0].set(0.0)                          # padding_idx=0
    w_ih = jax.random.uniform(ks[1], (E, 3 * H), jnp.float32, -k_h, k_h)   # [r|z|n]
    w_hh = jax.random.uniform(ks[2], (H, 3 * H), jnp.float32, -k_h, k_h)
    b_ih = jax.random.uniform(ks[3], (1, 3 * H), jnp.float32, -k_h, k_h)
    b_hh = jax.random.uniform(ks[4], (1, 3 * H), jnp.float32, -k_h, k_h)
    # hidden_to_item_tfm: xavier_uniform on (E,H) torch weight -> stored (H,E)
    bound = np.sqrt(6.0 / (H + E))
    w_proj = jax.random.uniform(ks[5], (H, E), jnp.float32, -bound, bound)
    b_proj = jax.random.uniform(ks[6], (1, E), jnp.float32, -k_h, k_h)

    # kernel-side layouts: fused-gate bf16 weights, folded biases, pre-transposed emb
    b_gx = jnp.concatenate([b_ih[:, :2 * H] + b_hh[:, :2 * H],   # r,z folded bias
                            b_ih[:, 2 * H:]], axis=1)            # n input bias
    b_hn = b_hh[:, 2 * H:]                                       # n hidden bias
    return dict(
        emb=emb, w_ih=w_ih, w_hh=w_hh, b_ih=b_ih, b_hh=b_hh,
        w_proj=w_proj, b_proj=b_proj,
        emb_bf=emb.astype(jnp.bfloat16),          # (V,E) for in-kernel gather
        emb_t_bf=emb.T.astype(jnp.bfloat16),      # (E,V) for canonical logits matmul
        w_i3=w_ih.astype(jnp.bfloat16),           # (E,3H)
        w_h3=w_hh.astype(jnp.bfloat16),           # (H,3H)
        b_gx=b_gx, b_hn=b_hn,
        w_p_bf=w_proj.astype(jnp.bfloat16),
    )


def reference_forward(params, item_x, quantize=False):
    """Plain-JAX reference. quantize=True rounds matmul operands to bf16 (as the
    kernel's MXU inputs do) but keeps f32 math -> tight numerical match."""
    q = (lambda a: a.astype(jnp.bfloat16).astype(jnp.float32)) if quantize else (lambda a: a)
    mm = lambda a, b: jnp.dot(q(a), q(b), precision=jax.lax.Precision.HIGHEST)
    lengths = jnp.sum((item_x != 0).astype(jnp.int32), axis=-1)
    x = jnp.take(params["emb"], item_x, axis=0)                    # (B, T, E)
    h = jnp.zeros((B, H), jnp.float32)
    for t in range(T):
        gx = mm(x[:, t, :], params["w_ih"]) + params["b_ih"]
        gh = mm(h, params["w_hh"]) + params["b_hh"]
        r = jax.nn.sigmoid(gx[:, :H] + gh[:, :H])
        z = jax.nn.sigmoid(gx[:, H:2 * H] + gh[:, H:2 * H])
        n = jnp.tanh(gx[:, 2 * H:] + r * gh[:, 2 * H:])
        h_new = (1.0 - z) * n + z * h
        h = jnp.where((t < lengths)[:, None], h_new, h)
    pref = mm(h, params["w_proj"]) + params["b_proj"]
    logits = mm(pref, params["emb"].T)
    return logits, h


# ------------------------------- main -------------------------------------
if __name__ == "__main__":
    key = jax.random.PRNGKey(0)
    k_par, k_len, k_items = jax.random.split(key, 3)
    params = init_params(k_par)

    # right-padded item sequences: ids in [1, V), zeros after `length`
    lengths = jax.random.randint(k_len, (B,), 3, T + 1)
    ids = jax.random.randint(k_items, (B, T), 1, ITEM_NUM)
    pos = jnp.arange(T)[None, :]
    item_x = jnp.where(pos < lengths[:, None], ids, 0).astype(jnp.int32)
    user_id = jnp.arange(B, dtype=jnp.int32) % USER_NUM   # unused by forward

    preds, logits, h_final = gru_forward(params, item_x, user_id)
    jax.block_until_ready((preds, logits, h_final))

    # 1) tight check vs a reference with identically bf16-rounded matmul operands
    ref_logits_q, ref_h_q = reference_forward(params, item_x, quantize=True)
    np.testing.assert_allclose(np.asarray(h_final), np.asarray(ref_h_q),
                               rtol=1e-3, atol=2e-3)
    np.testing.assert_allclose(np.asarray(logits), np.asarray(ref_logits_q),
                               rtol=1e-3, atol=5e-3)

    # 2) module-semantics (pure f32) check within the expected bf16-MXU error envelope
    ref_logits, ref_h = reference_forward(params, item_x, quantize=False)
    np.testing.assert_allclose(np.asarray(h_final), np.asarray(ref_h),
                               rtol=0.05, atol=0.05)
    np.testing.assert_allclose(np.asarray(logits), np.asarray(ref_logits),
                               rtol=0.05, atol=0.15)

    assert preds.shape == (B, TOPK)
    print("KERNEL_OK")
</pallas_src>

<mosaic_0001>
module attributes {stable_mosaic.version = 11 : i64} {
  func.func @gru_fused_kernel(%arg0: i32, %arg1: memref<64x1xi32, #tpu.memory_space<vmem>>, %arg2: memref<8x1xi32, #tpu.memory_space<vmem>>, %arg3: memref<128x32xbf16, #tpu.memory_space<vmem>>, %arg4: memref<32x128xbf16, #tpu.memory_space<vmem>>, %arg5: memref<32x96xbf16, #tpu.memory_space<vmem>>, %arg6: memref<32x96xbf16, #tpu.memory_space<vmem>>, %arg7: memref<1x96xf32, #tpu.memory_space<vmem>>, %arg8: memref<1x32xf32, #tpu.memory_space<vmem>>, %arg9: memref<32x32xbf16, #tpu.memory_space<vmem>>, %arg10: memref<1x32xf32, #tpu.memory_space<vmem>>, %arg11: memref<8x128xf32, #tpu.memory_space<vmem>>, %arg12: memref<8x32xf32, #tpu.memory_space<vmem>>, %arg13: memref<64x96xf32, #tpu.memory_space<vmem>>) attributes {dimension_semantics = [#tpu.dimension_semantics<arbitrary>], iteration_bounds = array<i64: 1>, scalar_prefetch = 0 : i64, scratch_operands = 1 : i64, tpu.core_type = #tpu.core_type<tc>, window_params = [{pipeline_mode = #tpu.pipeline_mode<synchronous>, transform_indices = @transform_0, window_bounds = array<i64: 64, 1>}, {pipeline_mode = #tpu.pipeline_mode<synchronous>, transform_indices = @transform_1, window_bounds = array<i64: 8, 1>}, {pipeline_mode = #tpu.pipeline_mode<synchronous>, transform_indices = @transform_2, window_bounds = array<i64: 128, 32>}, {pipeline_mode = #tpu.pipeline_mode<synchronous>, transform_indices = @transform_3, window_bounds = array<i64: 32, 128>}, {pipeline_mode = #tpu.pipeline_mode<synchronous>, transform_indices = @transform_4, window_bounds = array<i64: 32, 96>}, {pipeline_mode = #tpu.pipeline_mode<synchronous>, transform_indices = @transform_5, window_bounds = array<i64: 32, 96>}, {pipeline_mode = #tpu.pipeline_mode<synchronous>, transform_indices = @transform_6, window_bounds = array<i64: 1, 96>}, {pipeline_mode = #tpu.pipeline_mode<synchronous>, transform_indices = @transform_7, window_bounds = array<i64: 1, 32>}, {pipeline_mode = #tpu.pipeline_mode<synchronous>, transform_indices = @transform_8, window_bounds = array<i64: 32, 32>}, {pipeline_mode = #tpu.pipeline_mode<synchronous>, transform_indices = @transform_9, window_bounds = array<i64: 1, 32>}, {pipeline_mode = #tpu.pipeline_mode<synchronous>, transform_indices = @transform_10, window_bounds = array<i64: 8, 128>}, {pipeline_mode = #tpu.pipeline_mode<synchronous>, transform_indices = @transform_11, window_bounds = array<i64: 8, 32>}]} {
    %c0 = arith.constant 0 : index
    %c0_0 = arith.constant 0 : index
    %0 = vector.load %arg1[%c0, %c0_0] : memref<64x1xi32, #tpu.memory_space<vmem>>, vector<64x1xi32>
    %1 = tpu.iota {dimensions = array<i32: 1>} : vector<64x128xi32>
    %2 = vector.broadcast %0 : vector<64x1xi32> to vector<64x128xi32>
    %3 = arith.cmpi eq, %2, %1 : vector<64x128xi32>
    %4 = arith.extui %3 : vector<64x128xi1> to vector<64x128xi32>
    %5 = arith.sitofp %4 : vector<64x128xi32> to vector<64x128xf32>
    %6 = arith.truncf %5 : vector<64x128xf32> to vector<64x128xbf16>
    %c0_1 = arith.constant 0 : index
    %c0_2 = arith.constant 0 : index
    %7 = vector.load %arg3[%c0_1, %c0_2] : memref<128x32xbf16, #tpu.memory_space<vmem>>, vector<128x32xbf16>
    %cst = arith.constant dense<0.000000e+00> : vector<64x32xf32>
    %8 = tpu.matmul %6, %7, %cst {dimension_numbers = #tpu.dot_dimension_numbers<[1], [0], [0], [1], [0, 0, 1, 1], [], []>} : vector<64x128xbf16>, vector<128x32xbf16>, vector<64x32xf32> -> vector<64x32xf32>
    %9 = arith.truncf %8 : vector<64x32xf32> to vector<64x32xbf16>
    %c0_3 = arith.constant 0 : index
    %c0_4 = arith.constant 0 : index
    %10 = vector.load %arg5[%c0_3, %c0_4] : memref<32x96xbf16, #tpu.memory_space<vmem>>, vector<32x96xbf16>
    %cst_5 = arith.constant dense<0.000000e+00> : vector<64x96xf32>
    %11 = tpu.matmul %9, %10, %cst_5 {dimension_numbers = #tpu.dot_dimension_numbers<[1], [0], [0], [1], [0, 0, 1, 1], [], []>} : vector<64x32xbf16>, vector<32x96xbf16>, vector<64x96xf32> -> vector<64x96xf32>
    %c0_6 = arith.constant 0 : index
    %c0_7 = arith.constant 0 : index
    %12 = vector.load %arg7[%c0_6, %c0_7] : memref<1x96xf32, #tpu.memory_space<vmem>>, vector<1x96xf32>
    %13 = vector.broadcast %12 : vector<1x96xf32> to vector<64x96xf32>
    %14 = arith.addf %11, %13 : vector<64x96xf32>
    %c0_8 = arith.constant 0 : index
    %c0_9 = arith.constant 0 : index
    %15 = vector.load %arg13[%c0_8, %c0_9] : memref<64x96xf32, #tpu.memory_space<vmem>>, vector<64x96xf32>
    tpu.vector_store %arg13[%c0_8, %c0_9], %14 {strides = array<i32>} : memref<64x96xf32, #tpu.memory_space<vmem>>, vector<64x96xf32>,
    %c0_10 = arith.constant 0 : index
    %c0_11 = arith.constant 0 : index
    %16 = vector.load %arg6[%c0_10, %c0_11] : memref<32x96xbf16, #tpu.memory_space<vmem>>, vector<32x96xbf16>
    %c0_12 = arith.constant 0 : index
    %c0_13 = arith.constant 0 : index
    %17 = vector.load %arg8[%c0_12, %c0_13] : memref<1x32xf32, #tpu.memory_space<vmem>>, vector<1x32xf32>
    %c0_14 = arith.constant 0 : index
    %c0_15 = arith.constant 0 : index
    %18 = vector.load %arg2[%c0_14, %c0_15] : memref<8x1xi32, #tpu.memory_space<vmem>>, vector<8x1xi32>
    %cst_16 = arith.constant 0.000000e+00 : f32
    %19 = vector.broadcast %cst_16 : f32 to vector<8x32xf32>
    %c0_17 = arith.constant 0 : index
    %c0_18 = arith.constant 0 : index
    %20 = vector.load %arg13[%c0_17, %c0_18] : memref<64x96xf32, #tpu.memory_space<vmem>>, vector<8x96xf32>
    %21 = arith.truncf %19 : vector<8x32xf32> to vector<8x32xbf16>
    %cst_19 = arith.constant dense<0.000000e+00> : vector<8x96xf32>
    %22 = tpu.matmul %21, %16, %cst_19 {dimension_numbers = #tpu.dot_dimension_numbers<[1], [0], [0], [1], [0, 0, 1, 1], [], []>} : vector<8x32xbf16>, vector<32x96xbf16>, vector<8x96xf32> -> vector<8x96xf32>
    %23 = vector.extract_strided_slice %20 {offsets = [0, 0], sizes = [8, 64], strides = [1, 1]} : vector<8x96xf32> to vector<8x64xf32>
    %24 = vector.extract_strided_slice %22 {offsets = [0, 0], sizes = [8, 64], strides = [1, 1]} : vector<8x96xf32> to vector<8x64xf32>
    %25 = arith.addf %23, %24 : vector<8x64xf32>
    %26 = arith.negf %25 : vector<8x64xf32>
    %27 = math.exp %26 : vector<8x64xf32>
    %cst_20 = arith.constant 1.000000e+00 : f32
    %28 = vector.broadcast %cst_20 : f32 to vector<8x64xf32>
    %29 = arith.addf %28, %27 : vector<8x64xf32>
    %30 = arith.divf %28, %29 : vector<8x64xf32>
    %31 = vector.extract_strided_slice %30 {offsets = [0, 0], sizes = [8, 32], strides = [1, 1]} : vector<8x64xf32> to vector<8x32xf32>
    %32 = vector.extract_strided_slice %30 {offsets = [0, 32], sizes = [8, 32], strides = [1, 1]} : vector<8x64xf32> to vector<8x32xf32>
    %33 = vector.extract_strided_slice %20 {offsets = [0, 64], sizes = [8, 32], strides = [1, 1]} : vector<8x96xf32> to vector<8x32xf32>
    %34 = vector.extract_strided_slice %22 {offsets = [0, 64], sizes = [8, 32], strides = [1, 1]} : vector<8x96xf32> to vector<8x32xf32>
    %35 = vector.broadcast %17 : vector<1x32xf32> to vector<8x32xf32>
    %36 = arith.addf %34, %35 : vector<8x32xf32>
    %37 = arith.mulf %31, %36 : vector<8x32xf32>
    %38 = arith.addf %33, %37 : vector<8x32xf32>
    %39 = math.tanh %38 : vector<8x32xf32>
    %cst_21 = arith.constant 1.000000e+00 : f32
    %40 = vector.broadcast %cst_21 : f32 to vector<8x32xf32>
    %41 = arith.subf %40, %32 : vector<8x32xf32>
    %42 = arith.mulf %41, %39 : vector<8x32xf32>
    %43 = arith.mulf %32, %19 : vector<8x32xf32>
    %44 = arith.addf %42, %43 : vector<8x32xf32>
    %c0_i32 = arith.constant 0 : i32
    %45 = vector.broadcast %c0_i32 : i32 to vector<8x1xi32>
    %46 = arith.cmpi sgt, %18, %45 : vector<8x1xi32>
    %47 = vector.shape_cast %46 : vector<8x1xi1> to vector<8x1xi1>
    %48 = vector.broadcast %47 : vector<8x1xi1> to vector<8x32xi1>
    %49 = arith.select %48, %44, %19 : vector<8x32xi1>, vector<8x32xf32>
    %c8 = arith.constant 8 : index
    %c0_22 = arith.constant 0 : index
    %50 = vector.load %arg13[%c8, %c0_22] : memref<64x96xf32, #tpu.memory_space<vmem>>, vector<8x96xf32>
    %51 = arith.truncf %49 : vector<8x32xf32> to vector<8x32xbf16>
    %cst_23 = arith.constant dense<0.000000e+00> : vector<8x96xf32>
    %52 = tpu.matmul %51, %16, %cst_23 {dimension_numbers = #tpu.dot_dimension_numbers<[1], [0], [0], [1], [0, 0, 1, 1], [], []>} : vector<8x32xbf16>, vector<32x96xbf16>, vector<8x96xf32> -> vector<8x96xf32>
    %53 = vector.extract_strided_slice %50 {offsets = [0, 0], sizes = [8, 64], strides = [1, 1]} : vector<8x96xf32> to vector<8x64xf32>
    %54 = vector.extract_strided_slice %52 {offsets = [0, 0], sizes = [8, 64], strides = [1, 1]} : vector<8x96xf32> to vector<8x64xf32>
    %55 = arith.addf %53, %54 : vector<8x64xf32>
    %56 = arith.negf %55 : vector<8x64xf32>
    %57 = math.exp %56 : vector<8x64xf32>
    %cst_24 = arith.constant 1.000000e+00 : f32
    %58 = vector.broadcast %cst_24 : f32 to vector<8x64xf32>
    %59 = arith.addf %58, %57 : vector<8x64xf32>
    %60 = arith.divf %58, %59 : vector<8x64xf32>
    %61 = vector.extract_strided_slice %60 {offsets = [0, 0], sizes = [8, 32], strides = [1, 1]} : vector<8x64xf32> to vector<8x32xf32>
    %62 = vector.extract_strided_slice %60 {offsets = [0, 32], sizes = [8, 32], strides = [1, 1]} : vector<8x64xf32> to vector<8x32xf32>
    %63 = vector.extract_strided_slice %50 {offsets = [0, 64], sizes = [8, 32], strides = [1, 1]} : vector<8x96xf32> to vector<8x32xf32>
    %64 = vector.extract_strided_slice %52 {offsets = [0, 64], sizes = [8, 32], strides = [1, 1]} : vector<8x96xf32> to vector<8x32xf32>
    %65 = vector.broadcast %17 : vector<1x32xf32> to vector<8x32xf32>
    %66 = arith.addf %64, %65 : vector<8x32xf32>
    %67 = arith.mulf %61, %66 : vector<8x32xf32>
    %68 = arith.addf %63, %67 : vector<8x32xf32>
    %69 = math.tanh %68 : vector<8x32xf32>
    %cst_25 = arith.constant 1.000000e+00 : f32
    %70 = vector.broadcast %cst_25 : f32 to vector<8x32xf32>
    %71 = arith.subf %70, %62 : vector<8x32xf32>
    %72 = arith.mulf %71, %69 : vector<8x32xf32>
    %73 = arith.mulf %62, %49 : vector<8x32xf32>
    %74 = arith.addf %72, %73 : vector<8x32xf32>
    %c1_i32 = arith.constant 1 : i32
    %75 = vector.broadcast %c1_i32 : i32 to vector<8x1xi32>
    %76 = arith.cmpi sgt, %18, %75 : vector<8x1xi32>
    %77 = vector.shape_cast %76 : vector<8x1xi1> to vector<8x1xi1>
    %78 = vector.broadcast %77 : vector<8x1xi1> to vector<8x32xi1>
    %79 = arith.select %78, %74, %49 : vector<8x32xi1>, vector<8x32xf32>
    %c16 = arith.constant 16 : index
    %c0_26 = arith.constant 0 : index
    %80 = vector.load %arg13[%c16, %c0_26] : memref<64x96xf32, #tpu.memory_space<vmem>>, vector<8x96xf32>
    %81 = arith.truncf %79 : vector<8x32xf32> to vector<8x32xbf16>
    %cst_27 = arith.constant dense<0.000000e+00> : vector<8x96xf32>
    %82 = tpu.matmul %81, %16, %cst_27 {dimension_numbers = #tpu.dot_dimension_numbers<[1], [0], [0], [1], [0, 0, 1, 1], [], []>} : vector<8x32xbf16>, vector<32x96xbf16>, vector<8x96xf32> -> vector<8x96xf32>
    %83 = vector.extract_strided_slice %80 {offsets = [0, 0], sizes = [8, 64], strides = [1, 1]} : vector<8x96xf32> to vector<8x64xf32>
    %84 = vector.extract_strided_slice %82 {offsets = [0, 0], sizes = [8, 64], strides = [1, 1]} : vector<8x96xf32> to vector<8x64xf32>
    %85 = arith.addf %83, %84 : vector<8x64xf32>
    %86 = arith.negf %85 : vector<8x64xf32>
    %87 = math.exp %86 : vector<8x64xf32>
    %cst_28 = arith.constant 1.000000e+00 : f32
    %88 = vector.broadcast %cst_28 : f32 to vector<8x64xf32>
    %89 = arith.addf %88, %87 : vector<8x64xf32>
    %90 = arith.divf %88, %89 : vector<8x64xf32>
    %91 = vector.extract_strided_slice %90 {offsets = [0, 0], sizes = [8, 32], strides = [1, 1]} : vector<8x64xf32> to vector<8x32xf32>
    %92 = vector.extract_strided_slice %90 {offsets = [0, 32], sizes = [8, 32], strides = [1, 1]} : vector<8x64xf32> to vector<8x32xf32>
    %93 = vector.extract_strided_slice %80 {offsets = [0, 64], sizes = [8, 32], strides = [1, 1]} : vector<8x96xf32> to vector<8x32xf32>
    %94 = vector.extract_strided_slice %82 {offsets = [0, 64], sizes = [8, 32], strides = [1, 1]} : vector<8x96xf32> to vector<8x32xf32>
    %95 = vector.broadcast %17 : vector<1x32xf32> to vector<8x32xf32>
    %96 = arith.addf %94, %95 : vector<8x32xf32>
    %97 = arith.mulf %91, %96 : vector<8x32xf32>
    %98 = arith.addf %93, %97 : vector<8x32xf32>
    %99 = math.tanh %98 : vector<8x32xf32>
    %cst_29 = arith.constant 1.000000e+00 : f32
    %100 = vector.broadcast %cst_29 : f32 to vector<8x32xf32>
    %101 = arith.subf %100, %92 : vector<8x32xf32>
    %102 = arith.mulf %101, %99 : vector<8x32xf32>
    %103 = arith.mulf %92, %79 : vector<8x32xf32>
    %104 = arith.addf %102, %103 : vector<8x32xf32>
    %c2_i32 = arith.constant 2 : i32
    %105 = vector.broadcast %c2_i32 : i32 to vector<8x1xi32>
    %106 = arith.cmpi sgt, %18, %105 : vector<8x1xi32>
    %107 = vector.shape_cast %106 : vector<8x1xi1> to vector<8x1xi1>
    %108 = vector.broadcast %107 : vector<8x1xi1> to vector<8x32xi1>
    %109 = arith.select %108, %104, %79 : vector<8x32xi1>, vector<8x32xf32>
    %c24 = arith.constant 24 : index
    %c0_30 = arith.constant 0 : index
    %110 = vector.load %arg13[%c24, %c0_30] : memref<64x96xf32, #tpu.memory_space<vmem>>, vector<8x96xf32>
    %111 = arith.truncf %109 : vector<8x32xf32> to vector<8x32xbf16>
    %cst_31 = arith.constant dense<0.000000e+00> : vector<8x96xf32>
    %112 = tpu.matmul %111, %16, %cst_31 {dimension_numbers = #tpu.dot_dimension_numbers<[1], [0], [0], [1], [0, 0, 1, 1], [], []>} : vector<8x32xbf16>, vector<32x96xbf16>, vector<8x96xf32> -> vector<8x96xf32>
    %113 = vector.extract_strided_slice %110 {offsets = [0, 0], sizes = [8, 64], strides = [1, 1]} : vector<8x96xf32> to vector<8x64xf32>
    %114 = vector.extract_strided_slice %112 {offsets = [0, 0], sizes = [8, 64], strides = [1, 1]} : vector<8x96xf32> to vector<8x64xf32>
    %115 = arith.addf %113, %114 : vector<8x64xf32>
    %116 = arith.negf %115 : vector<8x64xf32>
    %117 = math.exp %116 : vector<8x64xf32>
    %cst_32 = arith.constant 1.000000e+00 : f32
    %118 = vector.broadcast %cst_32 : f32 to vector<8x64xf32>
    %119 = arith.addf %118, %117 : vector<8x64xf32>
    %120 = arith.divf %118, %119 : vector<8x64xf32>
    %121 = vector.extract_strided_slice %120 {offsets = [0, 0], sizes = [8, 32], strides = [1, 1]} : vector<8x64xf32> to vector<8x32xf32>
    %122 = vector.extract_strided_slice %120 {offsets = [0, 32], sizes = [8, 32], strides = [1, 1]} : vector<8x64xf32> to vector<8x32xf32>
    %123 = vector.extract_strided_slice %110 {offsets = [0, 64], sizes = [8, 32], strides = [1, 1]} : vector<8x96xf32> to vector<8x32xf32>
    %124 = vector.extract_strided_slice %112 {offsets = [0, 64], sizes = [8, 32], strides = [1, 1]} : vector<8x96xf32> to vector<8x32xf32>
    %125 = vector.broadcast %17 : vector<1x32xf32> to vector<8x32xf32>
    %126 = arith.addf %124, %125 : vector<8x32xf32>
    %127 = arith.mulf %121, %126 : vector<8x32xf32>
    %128 = arith.addf %123, %127 : vector<8x32xf32>
    %129 = math.tanh %128 : vector<8x32xf32>
    %cst_33 = arith.constant 1.000000e+00 : f32
    %130 = vector.broadcast %cst_33 : f32 to vector<8x32xf32>
    %131 = arith.subf %130, %122 : vector<8x32xf32>
    %132 = arith.mulf %131, %129 : vector<8x32xf32>
    %133 = arith.mulf %122, %109 : vector<8x32xf32>
    %134 = arith.addf %132, %133 : vector<8x32xf32>
    %c3_i32 = arith.constant 3 : i32
    %135 = vector.broadcast %c3_i32 : i32 to vector<8x1xi32>
    %136 = arith.cmpi sgt, %18, %135 : vector<8x1xi32>
    %137 = vector.shape_cast %136 : vector<8x1xi1> to vector<8x1xi1>
    %138 = vector.broadcast %137 : vector<8x1xi1> to vector<8x32xi1>
    %139 = arith.select %138, %134, %109 : vector<8x32xi1>, vector<8x32xf32>
    %c32 = arith.constant 32 : index
    %c0_34 = arith.constant 0 : index
    %140 = vector.load %arg13[%c32, %c0_34] : memref<64x96xf32, #tpu.memory_space<vmem>>, vector<8x96xf32>
    %141 = arith.truncf %139 : vector<8x32xf32> to vector<8x32xbf16>
    %cst_35 = arith.constant dense<0.000000e+00> : vector<8x96xf32>
    %142 = tpu.matmul %141, %16, %cst_35 {dimension_numbers = #tpu.dot_dimension_numbers<[1], [0], [0], [1], [0, 0, 1, 1], [], []>} : vector<8x32xbf16>, vector<32x96xbf16>, vector<8x96xf32> -> vector<8x96xf32>
    %143 = vector.extract_strided_slice %140 {offsets = [0, 0], sizes = [8, 64], strides = [1, 1]} : vector<8x96xf32> to vector<8x64xf32>
    %144 = vector.extract_strided_slice %142 {offsets = [0, 0], sizes = [8, 64], strides = [1, 1]} : vector<8x96xf32> to vector<8x64xf32>
    %145 = arith.addf %143, %144 : vector<8x64xf32>
    %146 = arith.negf %145 : vector<8x64xf32>
    %147 = math.exp %146 : vector<8x64xf32>
    %cst_36 = arith.constant 1.000000e+00 : f32
    %148 = vector.broadcast %cst_36 : f32 to vector<8x64xf32>
    %149 = arith.addf %148, %147 : vector<8x64xf32>
    %150 = arith.divf %148, %149 : vector<8x64xf32>
    %151 = vector.extract_strided_slice %150 {offsets = [0, 0], sizes = [8, 32], strides = [1, 1]} : vector<8x64xf32> to vector<8x32xf32>
    %152 = vector.extract_strided_slice %150 {offsets = [0, 32], sizes = [8, 32], strides = [1, 1]} : vector<8x64xf32> to vector<8x32xf32>
    %153 = vector.extract_strided_slice %140 {offsets = [0, 64], sizes = [8, 32], strides = [1, 1]} : vector<8x96xf32> to vector<8x32xf32>
    %154 = vector.extract_strided_slice %142 {offsets = [0, 64], sizes = [8, 32], strides = [1, 1]} : vector<8x96xf32> to vector<8x32xf32>
    %155 = vector.broadcast %17 : vector<1x32xf32> to vector<8x32xf32>
    %156 = arith.addf %154, %155 : vector<8x32xf32>
    %157 = arith.mulf %151, %156 : vector<8x32xf32>
    %158 = arith.addf %153, %157 : vector<8x32xf32>
    %159 = math.tanh %158 : vector<8x32xf32>
    %cst_37 = arith.constant 1.000000e+00 : f32
    %160 = vector.broadcast %cst_37 : f32 to vector<8x32xf32>
    %161 = arith.subf %160, %152 : vector<8x32xf32>
    %162 = arith.mulf %161, %159 : vector<8x32xf32>
    %163 = arith.mulf %152, %139 : vector<8x32xf32>
    %164 = arith.addf %162, %163 : vector<8x32xf32>
    %c4_i32 = arith.constant 4 : i32
    %165 = vector.broadcast %c4_i32 : i32 to vector<8x1xi32>
    %166 = arith.cmpi sgt, %18, %165 : vector<8x1xi32>
    %167 = vector.shape_cast %166 : vector<8x1xi1> to vector<8x1xi1>
    %168 = vector.broadcast %167 : vector<8x1xi1> to vector<8x32xi1>
    %169 = arith.select %168, %164, %139 : vector<8x32xi1>, vector<8x32xf32>
    %c40 = arith.constant 40 : index
    %c0_38 = arith.constant 0 : index
    %170 = vector.load %arg13[%c40, %c0_38] : memref<64x96xf32, #tpu.memory_space<vmem>>, vector<8x96xf32>
    %171 = arith.truncf %169 : vector<8x32xf32> to vector<8x32xbf16>
    %cst_39 = arith.constant dense<0.000000e+00> : vector<8x96xf32>
    %172 = tpu.matmul %171, %16, %cst_39 {dimension_numbers = #tpu.dot_dimension_numbers<[1], [0], [0], [1], [0, 0, 1, 1], [], []>} : vector<8x32xbf16>, vector<32x96xbf16>, vector<8x96xf32> -> vector<8x96xf32>
    %173 = vector.extract_strided_slice %170 {offsets = [0, 0], sizes = [8, 64], strides = [1, 1]} : vector<8x96xf32> to vector<8x64xf32>
    %174 = vector.extract_strided_slice %172 {offsets = [0, 0], sizes = [8, 64], strides = [1, 1]} : vector<8x96xf32> to vector<8x64xf32>
    %175 = arith.addf %173, %174 : vector<8x64xf32>
    %176 = arith.negf %175 : vector<8x64xf32>
    %177 = math.exp %176 : vector<8x64xf32>
    %cst_40 = arith.constant 1.000000e+00 : f32
    %178 = vector.broadcast %cst_40 : f32 to vector<8x64xf32>
    %179 = arith.addf %178, %177 : vector<8x64xf32>
    %180 = arith.divf %178, %179 : vector<8x64xf32>
    %181 = vector.extract_strided_slice %180 {offsets = [0, 0], sizes = [8, 32], strides = [1, 1]} : vector<8x64xf32> to vector<8x32xf32>
    %182 = vector.extract_strided_slice %180 {offsets = [0, 32], sizes = [8, 32], strides = [1, 1]} : vector<8x64xf32> to vector<8x32xf32>
    %183 = vector.extract_strided_slice %170 {offsets = [0, 64], sizes = [8, 32], strides = [1, 1]} : vector<8x96xf32> to vector<8x32xf32>
    %184 = vector.extract_strided_slice %172 {offsets = [0, 64], sizes = [8, 32], strides = [1, 1]} : vector<8x96xf32> to vector<8x32xf32>
    %185 = vector.broadcast %17 : vector<1x32xf32> to vector<8x32xf32>
    %186 = arith.addf %184, %185 : vector<8x32xf32>
    %187 = arith.mulf %181, %186 : vector<8x32xf32>
    %188 = arith.addf %183, %187 : vector<8x32xf32>
    %189 = math.tanh %188 : vector<8x32xf32>
    %cst_41 = arith.constant 1.000000e+00 : f32
    %190 = vector.broadcast %cst_41 : f32 to vector<8x32xf32>
    %191 = arith.subf %190, %182 : vector<8x32xf32>
    %192 = arith.mulf %191, %189 : vector<8x32xf32>
    %193 = arith.mulf %182, %169 : vector<8x32xf32>
    %194 = arith.addf %192, %193 : vector<8x32xf32>
    %c5_i32 = arith.constant 5 : i32
    %195 = vector.broadcast %c5_i32 : i32 to vector<8x1xi32>
    %196 = arith.cmpi sgt, %18, %195 : vector<8x1xi32>
    %197 = vector.shape_cast %196 : vector<8x1xi1> to vector<8x1xi1>
    %198 = vector.broadcast %197 : vector<8x1xi1> to vector<8x32xi1>
    %199 = arith.select %198, %194, %169 : vector<8x32xi1>, vector<8x32xf32>
    %c48 = arith.constant 48 : index
    %c0_42 = arith.constant 0 : index
    %200 = vector.load %arg13[%c48, %c0_42] : memref<64x96xf32, #tpu.memory_space<vmem>>, vector<8x96xf32>
    %201 = arith.truncf %199 : vector<8x32xf32> to vector<8x32xbf16>
    %cst_43 = arith.constant dense<0.000000e+00> : vector<8x96xf32>
    %202 = tpu.matmul %201, %16, %cst_43 {dimension_numbers = #tpu.dot_dimension_numbers<[1], [0], [0], [1], [0, 0, 1, 1], [], []>} : vector<8x32xbf16>, vector<32x96xbf16>, vector<8x96xf32> -> vector<8x96xf32>
    %203 = vector.extract_strided_slice %200 {offsets = [0, 0], sizes = [8, 64], strides = [1, 1]} : vector<8x96xf32> to vector<8x64xf32>
    %204 = vector.extract_strided_slice %202 {offsets = [0, 0], sizes = [8, 64], strides = [1, 1]} : vector<8x96xf32> to vector<8x64xf32>
    %205 = arith.addf %203, %204 : vector<8x64xf32>
    %206 = arith.negf %205 : vector<8x64xf32>
    %207 = math.exp %206 : vector<8x64xf32>
    %cst_44 = arith.constant 1.000000e+00 : f32
    %208 = vector.broadcast %cst_44 : f32 to vector<8x64xf32>
    %209 = arith.addf %208, %207 : vector<8x64xf32>
    %210 = arith.divf %208, %209 : vector<8x64xf32>
    %211 = vector.extract_strided_slice %210 {offsets = [0, 0], sizes = [8, 32], strides = [1, 1]} : vector<8x64xf32> to vector<8x32xf32>
    %212 = vector.extract_strided_slice %210 {offsets = [0, 32], sizes = [8, 32], strides = [1, 1]} : vector<8x64xf32> to vector<8x32xf32>
    %213 = vector.extract_strided_slice %200 {offsets = [0, 64], sizes = [8, 32], strides = [1, 1]} : vector<8x96xf32> to vector<8x32xf32>
    %214 = vector.extract_strided_slice %202 {offsets = [0, 64], sizes = [8, 32], strides = [1, 1]} : vector<8x96xf32> to vector<8x32xf32>
    %215 = vector.broadcast %17 : vector<1x32xf32> to vector<8x32xf32>
    %216 = arith.addf %214, %215 : vector<8x32xf32>
    %217 = arith.mulf %211, %216 : vector<8x32xf32>
    %218 = arith.addf %213, %217 : vector<8x32xf32>
    %219 = math.tanh %218 : vector<8x32xf32>
    %cst_45 = arith.constant 1.000000e+00 : f32
    %220 = vector.broadcast %cst_45 : f32 to vector<8x32xf32>
    %221 = arith.subf %220, %212 : vector<8x32xf32>
    %222 = arith.mulf %221, %219 : vector<8x32xf32>
    %223 = arith.mulf %212, %199 : vector<8x32xf32>
    %224 = arith.addf %222, %223 : vector<8x32xf32>
    %c6_i32 = arith.constant 6 : i32
    %225 = vector.broadcast %c6_i32 : i32 to vector<8x1xi32>
    %226 = arith.cmpi sgt, %18, %225 : vector<8x1xi32>
    %227 = vector.shape_cast %226 : vector<8x1xi1> to vector<8x1xi1>
    %228 = vector.broadcast %227 : vector<8x1xi1> to vector<8x32xi1>
    %229 = arith.select %228, %224, %199 : vector<8x32xi1>, vector<8x32xf32>
    %c56 = arith.constant 56 : index
    %c0_46 = arith.constant 0 : index
    %230 = vector.load %arg13[%c56, %c0_46] : memref<64x96xf32, #tpu.memory_space<vmem>>, vector<8x96xf32>
    %231 = arith.truncf %229 : vector<8x32xf32> to vector<8x32xbf16>
    %cst_47 = arith.constant dense<0.000000e+00> : vector<8x96xf32>
    %232 = tpu.matmul %231, %16, %cst_47 {dimension_numbers = #tpu.dot_dimension_numbers<[1], [0], [0], [1], [0, 0, 1, 1], [], []>} : vector<8x32xbf16>, vector<32x96xbf16>, vector<8x96xf32> -> vector<8x96xf32>
    %233 = vector.extract_strided_slice %230 {offsets = [0, 0], sizes = [8, 64], strides = [1, 1]} : vector<8x96xf32> to vector<8x64xf32>
    %234 = vector.extract_strided_slice %232 {offsets = [0, 0], sizes = [8, 64], strides = [1, 1]} : vector<8x96xf32> to vector<8x64xf32>
    %235 = arith.addf %233, %234 : vector<8x64xf32>
    %236 = arith.negf %235 : vector<8x64xf32>
    %237 = math.exp %236 : vector<8x64xf32>
    %cst_48 = arith.constant 1.000000e+00 : f32
    %238 = vector.broadcast %cst_48 : f32 to vector<8x64xf32>
    %239 = arith.addf %238, %237 : vector<8x64xf32>
    %240 = arith.divf %238, %239 : vector<8x64xf32>
    %241 = vector.extract_strided_slice %240 {offsets = [0, 0], sizes = [8, 32], strides = [1, 1]} : vector<8x64xf32> to vector<8x32xf32>
    %242 = vector.extract_strided_slice %240 {offsets = [0, 32], sizes = [8, 32], strides = [1, 1]} : vector<8x64xf32> to vector<8x32xf32>
    %243 = vector.extract_strided_slice %230 {offsets = [0, 64], sizes = [8, 32], strides = [1, 1]} : vector<8x96xf32> to vector<8x32xf32>
    %244 = vector.extract_strided_slice %232 {offsets = [0, 64], sizes = [8, 32], strides = [1, 1]} : vector<8x96xf32> to vector<8x32xf32>
    %245 = vector.broadcast %17 : vector<1x32xf32> to vector<8x32xf32>
    %246 = arith.addf %244, %245 : vector<8x32xf32>
    %247 = arith.mulf %241, %246 : vector<8x32xf32>
    %248 = arith.addf %243, %247 : vector<8x32xf32>
    %249 = math.tanh %248 : vector<8x32xf32>
    %cst_49 = arith.constant 1.000000e+00 : f32
    %250 = vector.broadcast %cst_49 : f32 to vector<8x32xf32>
    %251 = arith.subf %250, %242 : vector<8x32xf32>
    %252 = arith.mulf %251, %249 : vector<8x32xf32>
    %253 = arith.mulf %242, %229 : vector<8x32xf32>
    %254 = arith.addf %252, %253 : vector<8x32xf32>
    %c7_i32 = arith.constant 7 : i32
    %255 = vector.broadcast %c7_i32 : i32 to vector<8x1xi32>
    %256 = arith.cmpi sgt, %18, %255 : vector<8x1xi32>
    %257 = vector.shape_cast %256 : vector<8x1xi1> to vector<8x1xi1>
    %258 = vector.broadcast %257 : vector<8x1xi1> to vector<8x32xi1>
    %259 = arith.select %258, %254, %229 : vector<8x32xi1>, vector<8x32xf32>
    %c0_50 = arith.constant 0 : index
    %c0_51 = arith.constant 0 : index
    %260 = vector.load %arg12[%c0_50, %c0_51] : memref<8x32xf32, #tpu.memory_space<vmem>>, vector<8x32xf32>
    tpu.vector_store %arg12[%c0_50, %c0_51], %259 {strides = array<i32>} : memref<8x32xf32, #tpu.memory_space<vmem>>, vector<8x32xf32>,
    %261 = arith.truncf %259 : vector<8x32xf32> to vector<8x32xbf16>
    %c0_52 = arith.constant 0 : index
    %c0_53 = arith.constant 0 : index
    %262 = vector.load %arg9[%c0_52, %c0_53] : memref<32x32xbf16, #tpu.memory_space<vmem>>, vector<32x32xbf16>
    %cst_54 = arith.constant dense<0.000000e+00> : vector<8x32xf32>
    %263 = tpu.matmul %261, %262, %cst_54 {dimension_numbers = #tpu.dot_dimension_numbers<[1], [0], [0], [1], [0, 0, 1, 1], [], []>} : vector<8x32xbf16>, vector<32x32xbf16>, vector<8x32xf32> -> vector<8x32xf32>
    %c0_55 = arith.constant 0 : index
    %c0_56 = arith.constant 0 : index
    %264 = vector.load %arg10[%c0_55, %c0_56] : memref<1x32xf32, #tpu.memory_space<vmem>>, vector<1x32xf32>
    %265 = vector.broadcast %264 : vector<1x32xf32> to vector<8x32xf32>
    %266 = arith.addf %263, %265 : vector<8x32xf32>
    %267 = arith.truncf %266 : vector<8x32xf32> to vector<8x32xbf16>
    %c0_57 = arith.constant 0 : index
    %c0_58 = arith.constant 0 : index
    %268 = vector.load %arg4[%c0_57, %c0_58] : memref<32x128xbf16, #tpu.memory_space<vmem>>, vector<32x128xbf16>
    %cst_59 = arith.constant dense<0.000000e+00> : vector<8x128xf32>
    %269 = tpu.matmul %267, %268, %cst_59 {dimension_numbers = #tpu.dot_dimension_numbers<[1], [0], [0], [1], [0, 0, 1, 1], [], []>} : vector<8x32xbf16>, vector<32x128xbf16>, vector<8x128xf32> -> vector<8x128xf32>
    %c0_60 = arith.constant 0 : index
    %c0_61 = arith.constant 0 : index
    %270 = vector.load %arg11[%c0_60, %c0_61] : memref<8x128xf32, #tpu.memory_space<vmem>>, vector<8x128xf32>
    tpu.vector_store %arg11[%c0_60, %c0_61], %269 {strides = array<i32>} : memref<8x128xf32, #tpu.memory_space<vmem>>, vector<8x128xf32>,
    return
  }
  func.func @transform_0(%arg0: i32) -> (i32, i32) {
    %c0_i32 = arith.constant 0 : i32
    %c0_i32_0 = arith.constant 0 : i32
    %c0_i32_1 = arith.constant 0 : i32
    return %c0_i32, %c0_i32_0 : i32, i32
  }
  func.func @transform_1(%arg0: i32) -> (i32, i32) {
    %c0_i32 = arith.constant 0 : i32
    %c0_i32_0 = arith.constant 0 : i32
    %c0_i32_1 = arith.constant 0 : i32
    return %c0_i32, %c0_i32_0 : i32, i32
  }
  func.func @transform_2(%arg0: i32) -> (i32, i32) {
    %c0_i32 = arith.constant 0 : i32
    %c0_i32_0 = arith.constant 0 : i32
    %c0_i32_1 = arith.constant 0 : i32
    return %c0_i32, %c0_i32_0 : i32, i32
  }
  func.func @transform_3(%arg0: i32) -> (i32, i32) {
    %c0_i32 = arith.constant 0 : i32
    %c0_i32_0 = arith.constant 0 : i32
    %c0_i32_1 = arith.constant 0 : i32
    return %c0_i32, %c0_i32_0 : i32, i32
  }
  func.func @transform_4(%arg0: i32) -> (i32, i32) {
    %c0_i32 = arith.constant 0 : i32
    %c0_i32_0 = arith.constant 0 : i32
    %c0_i32_1 = arith.constant 0 : i32
    return %c0_i32, %c0_i32_0 : i32, i32
  }
  func.func @transform_5(%arg0: i32) -> (i32, i32) {
    %c0_i32 = arith.constant 0 : i32
    %c0_i32_0 = arith.constant 0 : i32
    %c0_i32_1 = arith.constant 0 : i32
    return %c0_i32, %c0_i32_0 : i32, i32
  }
  func.func @transform_6(%arg0: i32) -> (i32, i32) {
    %c0_i32 = arith.constant 0 : i32
    %c0_i32_0 = arith.constant 0 : i32
    %c0_i32_1 = arith.constant 0 : i32
    return %c0_i32, %c0_i32_0 : i32, i32
  }
  func.func @transform_7(%arg0: i32) -> (i32, i32) {
    %c0_i32 = arith.constant 0 : i32
    %c0_i32_0 = arith.constant 0 : i32
    %c0_i32_1 = arith.constant 0 : i32
    return %c0_i32, %c0_i32_0 : i32, i32
  }
  func.func @transform_8(%arg0: i32) -> (i32, i32) {
    %c0_i32 = arith.constant 0 : i32
    %c0_i32_0 = arith.constant 0 : i32
    %c0_i32_1 = arith.constant 0 : i32
    return %c0_i32, %c0_i32_0 : i32, i32
  }
  func.func @transform_9(%arg0: i32) -> (i32, i32) {
    %c0_i32 = arith.constant 0 : i32
    %c0_i32_0 = arith.constant 0 : i32
    %c0_i32_1 = arith.constant 0 : i32
    return %c0_i32, %c0_i32_0 : i32, i32
  }
  func.func @transform_10(%arg0: i32) -> (i32, i32) {
    %c0_i32 = arith.constant 0 : i32
    %c0_i32_0 = arith.constant 0 : i32
    %c0_i32_1 = arith.constant 0 : i32
    return %c0_i32, %c0_i32_0 : i32, i32
  }
  func.func @transform_11(%arg0: i32) -> (i32, i32) {
    %c0_i32 = arith.constant 0 : i32
    %c0_i32_0 = arith.constant 0 : i32
    %c0_i32_1 = arith.constant 0 : i32
    return %c0_i32, %c0_i32_0 : i32, i32
  }
}

</mosaic_0001>

<bundles_post_ra>
// kernel: gru_forward.1
= control target key start
LH: loop header
LB: loop body
LE: loop exit
PB: predicated region body
PF: predicated region fallthrough
CT: control target
= control target key end

     0   :  { %v1491_v2 = vmov 0   ;;  %s1795_s0 = inlined_call_operand.vmem [shape: s32[64,1], index: 0, kind: input, shape index: {}]   ;;  %s1796_s1 = inlined_call_operand.vmem [shape: s32[8,1], index: 1, kind: input, shape index: {}]   ;;  %s1797_s2 = inlined_call_operand.vmem [shape: bf16[128,32], index: 2, kind: input, shape index: {}]   ;;  %s1798_s3 = inlined_call_operand.vmem [shape: bf16[32,128], index: 3, kind: input, shape index: {}]   ;;  %s1799_s4 = inlined_call_operand.vmem [shape: bf16[32,96], index: 4, kind: input, shape index: {}]   ;;  %s1800_s5 = inlined_call_operand.vmem [shape: bf16[32,96], index: 5, kind: input, shape index: {}]   ;;  %s1801_s6 = inlined_call_operand.vmem [shape: f32[1,96], index: 6, kind: input, shape index: {}]   ;;  %s1802_s7 = inlined_call_operand.vmem [shape: f32[1,32], index: 7, kind: input, shape index: {}]   ;;  %s1803_s8 = inlined_call_operand.vmem [shape: bf16[32,32], index: 8, kind: input, shape index: {}]   ;;  %s1804_s9 = inlined_call_operand.vmem [shape: f32[1,32], index: 9, kind: input, shape index: {}]   ;;  %s1805_s10 = inlined_call_operand.vmem [shape: f32[8,128], index: 10, kind: output, shape index: {0}]   ;;  %s1806_s11 = inlined_call_operand.hbm [shape: f32[8,32], index: 11, kind: output, shape index: {1}]  }
   0x1   :  { %v41_v0 = vld [vmem:[%s1795_s0 + $0x10] sm:$0xff]  ;;  %v39_v1 = vld [vmem:[%s1795_s0] sm:$0xff]  ;;  %1404 = vset.pattern.permute.xlu1 %v1491_v2  ;;  %1403 = vset.pattern.permute.xlu0 %v1491_v2  ;;  %v42_v3 = vld [vmem:[%s1795_s0 + $0x18] sm:$0xff] }
   0x2   :  { %56 = vperm.xlu1 %1404, %v41_v0   ;;  %50 = vperm.xlu0 %1403, %v39_v1   ;;  %v40_v4 = vld [vmem:[%s1795_s0 + $0x8] sm:$0xff]  ;;  %v1405_v5 = vld [vmem:[%s1797_s2 + $0x38] sm:$0xff]   ;;  %v1406_v6 = vld [vmem:[%s1797_s2 + $0x30] sm:$0xff]  }
   0x3   :  { %1280 = vmatprep.subr.bf16.mxu0 %v1405_v5  ;;  %v44_v7 = vld [vmem:[%s1795_s0 + $0x28] sm:$0xff]  ;;  %v43_v8 = vld [vmem:[%s1795_s0 + $0x20] sm:$0xff]  ;;  %v46_v10 = vld [vmem:[%s1795_s0 + $0x38] sm:$0xff] }
   0x4   :  { %1281 = vmatpush3.bf16.msra.mxu0 %v1405_v5  ;;  %v1407_v9 = vld [vmem:[%s1797_s2 + $0x28] sm:$0xff]   ;;  %v45_v11 = vld [vmem:[%s1795_s0 + $0x30] sm:$0xff]  ;;  %v1408_v12 = vld [vmem:[%s1797_s2 + $0x20] sm:$0xff]  }
   0x5   :  { %1282 = vmatprep.subr.bf16.mxu0 %v1406_v6  ;;  %v1409_v13 = vld [vmem:[%s1797_s2 + $0x18] sm:$0xff]  }
   0x6   :  { %59 = vperm.xlu1 %1404, %v42_v3   ;;  %53 = vperm.xlu0 %1403, %v40_v4  }
   0x8   :  { %1283 = vmatpush3.bf16.msra.mxu0 %v1406_v6 }
   0x9   :  { %1284 = vmatprep.subr.bf16.mxu0 %v1407_v9 }
   0xa   :  { %65 = vperm.xlu1 %1404, %v44_v7   ;;  %62 = vperm.xlu0 %1403, %v43_v8  }
   0xc   :  { %1285 = vmatpush3.bf16.msra.mxu0 %v1407_v9 }
   0xd   :  { %1286 = vmatprep.subr.bf16.mxu0 %v1408_v12 }
   0xe   :  { %71 = vperm.xlu1 %1404, %v46_v10   ;;  %68 = vperm.xlu0 %1403, %v45_v11  }
   0xf   :  { %17 = vsyncpa [#allocation4], 0  ;;  %v1410_v14 = vld [vmem:[%s1797_s2 + $0x10] sm:$0xff]   ;;  %v1411_v15 = vld [vmem:[%s1797_s2 + $0x8] sm:$0xff]   ;;  %v47_v17 = vlaneseq  ;;  %v1492_v23 = vmov 1.0|1.0  }
  0x10   :  { %1287 = vmatpush3.bf16.msra.mxu0 %v1408_v12  ;;  %v1412_v16 = vld [vmem:[%s1797_s2] sm:$0xff]   ;;  %v1413_v28 = vld [vmem:[%s1799_s4 + $0x8] sm:$0xff]   ;;  %v1493_v30 = vmov 0.0   ;;  %vm1494_vm12 = vmmov 0   ;;  %s1495_s18 = smov 64   ;;  %vm257_vm13 = vcmask 261120  }
  0x11   :  { %1288 = vmatprep.subr.bf16.mxu0 %v1409_v13  ;;  %v48_v20 = vand.u32 127, %v47_v17  ;;  %1304 = vmatprep.subr.bf16.mxu1 %v1413_v28  ;;  %v1414_v29 = vld [vmem:[%s1799_s4] sm:$0xff]   ;;  %v1618_v31 = vld [vmem:[%s1800_s5 + $0x8] sm:$0xff]   ;;  %vm335_vm14 = vcmask 785408   ;;  %s1497_s28 = smov [#allocation3]  }
  0x12   :  { %1305 = vmatpush3.bf16.msra.mxu1 %v1413_v28  ;;  %v1626_v32 = vld [vmem:[%s1800_s5] sm:$0xff]   ;;  %s1166_s2 = sshll.u32 %s1497_s28, 4  ;;  %s1167_s2 = int_to_ptr.vmem [resolvable:$true] %s1166_s2 }
  0x13   :  { %1306 = vmatprep.subr.bf16.mxu1 %v1414_v29  ;;  %v1210_v33 = vld [vmem:[%s1802_s7] ss:$0 sm:$0xff]  ;;  %s1469_s29 = scalar_lea.vmem %s1167_s2, 128  ;;  %p1474_p1 = scmp.lt.s32.totalorder %s1167_s2, %s1167_s2 }
  0x14   :  { %1289 = vmatpush3.bf16.msra.mxu0 %v1409_v13  ;;  %418 = vrot.lane.b32.xlu0 %v1210_v33, %s1495_s18  ;;  %v1200_v46 = vld [vmem:[%s1801_s6] ss:$0 sm:$0xff]  ;;  %p1470_p0 = scmp.ne.s32.totalorder %s1167_s2, %s1469_s29  ;;  %p1475_p2 = scmp.lt.s32.totalorder %s1469_s29, %s1469_s29 }
  0x15   :  { %1290 = vmatprep.subr.bf16.mxu0 %v1410_v14  ;;  %v1667_v63 = vld [vmem:[%s1796_s1] sm:$0xff]  ;;  %s1496_s1 = smov 96  }
  0x16   :  { %1307 = vmatpush3.bf16.msra.mxu1 %v1414_v29  ;;  %vm441_vm15 = vcmp.gt.s32.totalorder %v1667_v63, 0  ;;  %p1476_p3 = por %p1475_p2, %p1474_p1 }
  0x17   :  { %1316 = vmatprep.subr.bf16.mxu1 %v1493_v30  ;;  %v442_v6 = vsel %vm441_vm15, 1, %v1491_v2  ;;  %vm1015_vm15 = vcmp.gt.s32.totalorder %v1667_v63, 7 }
  0x18   :  { %1291 = vmatpush3.bf16.msra.mxu0 %v1410_v14  ;;  %p1477_p4 = pnand %p1476_p3, %p1470_p0 }
  0x19   :  { %1292 = vmatprep.subr.bf16.mxu0 %v1411_v15 }
  0x1c   :  { %1293 = vmatpush3.bf16.msra.mxu0 %v1411_v15 }
  0x1d   :  { %1294 = vmatprep.subr.bf16.mxu0 %v1412_v16 }
  0x20   :  { %1295 = vmatpush3.bf16.msra.mxu0 %v1412_v16 }
  0x21   :  { %1340 = vmatprep.subr.bf16.mxu0 %v1493_v30 }
  0x7d   :  { %v57_v18 = vpop.permute.xlu1 %56  ;;  %v51_v19 = vpop.permute.xlu0 %50 }
  0x7e   :  { %vm75_vm0 = vcmp.eq.s32.totalorder %v57_v18, %v48_v20  ;;  %vm73_vm3 = vcmp.eq.s32.totalorder %v51_v19, %v48_v20 }
  0x81   :  { %v60_v21 = vpop.permute.xlu1 %59  ;;  %v54_v22 = vpop.permute.xlu0 %53 }
  0x82   :  { %vm76_vm1 = vcmp.eq.s32.totalorder %v60_v21, %v48_v20  ;;  %vm74_vm2 = vcmp.eq.s32.totalorder %v54_v22, %v48_v20 }
  0x83   :  { %vm1194_vm4 = vmpackc.low %vm76_vm1, %vm75_vm0  ;;  %vm523_vm1 = vcmp.gt.s32.totalorder %v1667_v63, 1 }
  0x84   :  { %vm1192_vm5 = vmpackc.low %vm74_vm2, %vm73_vm3  ;;  %vm605_vm3 = vcmp.gt.s32.totalorder %v1667_v63, 2 }
  0x85   :  { %1296 = vmatprep.mubr.msk.bf16.mxu0 %vm1192_vm5, %v1492_v23  ;;  %v66_v24 = vpop.permute.xlu1 %65  ;;  %v63_v25 = vpop.permute.xlu0 %62  ;;  %vm687_vm5 = vcmp.gt.s32.totalorder %v1667_v63, 3 }
  0x86   :  { %vm78_vm6 = vcmp.eq.s32.totalorder %v66_v24, %v48_v20  ;;  %1297 = vmatmul.mubr.msk.bf16.vlgmr.msra.gmra.mxu0 %vm1194_vm4, %v1492_v23  ;;  %vm77_vm7 = vcmp.eq.s32.totalorder %v63_v25, %v48_v20 }
  0x87   :  { %vm1196_vm8 = vmpackc.low %vm78_vm6, %vm77_vm7  ;;  %1341 = vmatpush3.bf16.msra.mxu0 %v1618_v31  ;;  %vm769_vm7 = vcmp.gt.s32.totalorder %v1667_v63, 4 }
  0x88   :  { %1300 = vmatprep.mubr.msk.bf16.mxu0 %vm1196_vm8, %v1492_v23  ;;  %1342 = vmatprep.subr.bf16.mxu0 %v1493_v30 }
  0x89   :  { %v72_v26 = vpop.permute.xlu1 %71  ;;  %v69_v27 = vpop.permute.xlu0 %68 }
  0x8a   :  { %vm80_vm9 = vcmp.eq.s32.totalorder %v72_v26, %v48_v20  ;;  %vm79_vm10 = vcmp.eq.s32.totalorder %v69_v27, %v48_v20 }
  0x8b   :  { %vm1198_vm11 = vmpackc.low %vm80_vm9, %vm79_vm10  ;;  %1343 = vmatpush3.bf16.msra.mxu0 %v1626_v32  ;;  %vm851_vm9 = vcmp.gt.s32.totalorder %v1667_v63, 5 }
  0x8c   :  { %1356 = vmatprep.subr.bf16.mxu0 %v1493_v30 }
  0x8d   :  { %v1662_v62 = vpop.permute.xlu0 %418 }
  0x8e   :  { %1301 = vmatmul.mubr.msk.bf16.gmra.mxu0 %vm1198_vm11, %v1492_v23  ;;  %vm933_vm11 = vcmp.gt.s32.totalorder %v1667_v63, 6 }
  0x8f   :  { %1344 = vmatprep.mubr.msk.bf16.mxu0 %vm1494_vm12, %v1493_v30 }
 0x146   :  { %v1298_v34 = vpop.f32.mrf.mxu0 }
 0x148   :  { %v199_v35 = vpop.f32.mrf.mxu0 }
 0x14a   :  { %v1299_v36 = vpop.f32.mrf.mxu0 }
 0x14b   :  { %v231_v39 = vpack.c.bf16 %v1299_v36, %v1298_v34 }
 0x14c   :  { %v202_v37 = vpop.f32.mrf.mxu0 }
 0x14d   :  { %v230_v38 = vpack.c.bf16 %v202_v37, %v199_v35  ;;  %v524_v35 = vsel %vm523_vm1, 1, %v1491_v2 }
 0x14e   :  { %v1302_v40 = vpop.f32.mrf.mxu0 }
 0x14f   :  { %1308 = vmatprep.mubr.msk.bf16.mxu1 %vm257_vm13, %v230_v38 }
 0x150   :  { %v215_v41 = vpop.f32.mrf.mxu0  ;;  %1309 = vmatmul.mubr.msk.bf16.vlgmr.msra.gmra.mxu1 %vm257_vm13, %v231_v39 }
 0x151   :  { %1317 = vmatpush3.bf16.msra.mxu1 %v1618_v31 }
 0x152   :  { %v1303_v42 = vpop.f32.mrf.mxu0  ;;  %1318 = vmatprep.subr.bf16.mxu1 %v1493_v30 }
 0x153   :  { %v233_v45 = vpack.c.bf16 %v1303_v42, %v1302_v40 }
 0x154   :  { %v218_v43 = vpop.f32.mrf.mxu0 }
 0x155   :  { %v232_v44 = vpack.c.bf16 %v218_v43, %v215_v41  ;;  %1319 = vmatpush3.bf16.msra.mxu1 %v1626_v32 }
 0x156   :  { %1324 = vmatprep.subr.bf16.mxu1 %v1493_v30 }
 0x157   :  { %1312 = vmatprep.mubr.msk.bf16.mxu1 %vm257_vm13, %v232_v44 }
 0x158   :  { %1313 = vmatmul.mubr.msk.bf16.gmra.mxu1 %vm257_vm13, %v233_v45 }
 0x159   :  { %1320 = vmatprep.mubr.msk.bf16.mxu1 %vm1494_vm12, %v1493_v30 }
 0x160   :  { %1321 = vmatmul.mubr.bf16.vlgmr.msra.gmra.mxu1 %v1491_v2 }
 0x161   :  { %1325 = vmatpush3.bf16.msra.mxu1 %v1618_v31  ;;  %1328 = vmatprep.mubr.msk.bf16.mxu1 %vm1494_vm12, %v1493_v30 }
 0x162   :  { %1326 = vmatprep.subr.bf16.mxu1 %v1493_v30 }
 0x165   :  { %1327 = vmatpush3.bf16.msra.mxu1 %v1626_v32 }
 0x166   :  { %1332 = vmatprep.subr.bf16.mxu1 %v1493_v30 }
 0x210   :  { %v1310_v47 = vpop.f32.mrf.mxu1 }
 0x211   :  { %v313_v48 = vadd.f32 %v1310_v47, %v1200_v46 }
 0x212   :  { %v304_v49 = vpop.f32.mrf.mxu1 }
 0x213   :  { %338 = vst.msk [vmem:[#allocation2 + $0x10] sm:$0xff] %vm335_vm14, %v313_v48  ;;  %v305_v50 = vadd.f32 %v1200_v46, %v304_v49 }
 0x214   :  { %v1311_v51 = vpop.f32.mrf.mxu1 }
 0x215   :  { %336 = vst.msk [vmem:[#allocation2] sm:$0xff] %vm335_vm14, %v305_v50  ;;  %v316_v52 = vadd.f32 %v1311_v51, %v1200_v46 }
 0x216   :  { %v307_v53 = vpop.f32.mrf.mxu1 }
 0x217   :  { %339 = vst.msk [vmem:[#allocation2 + $0x18] sm:$0xff] %vm335_vm14, %v316_v52  ;;  %v308_v54 = vadd.f32 %v1200_v46, %v307_v53 }
 0x218   :  { %v1314_v55 = vpop.f32.mrf.mxu1 }
 0x219   :  { %337 = vst.msk [vmem:[#allocation2 + $0x8] sm:$0xff] %vm335_vm14, %v308_v54  ;;  %v329_v56 = vadd.f32 %v1314_v55, %v1200_v46 }
 0x21a   :  { %v320_v57 = vpop.f32.mrf.mxu1 }
 0x21b   :  { %342 = vst.msk [vmem:[#allocation2 + $0x30] sm:$0xff] %vm335_vm14, %v329_v56  ;;  %v321_v58 = vadd.f32 %v1200_v46, %v320_v57 }
 0x21c   :  { %v1315_v59 = vpop.f32.mrf.mxu1  ;;  %v350_v8 = vld [vmem:[#allocation2] sm:$0xff] }
 0x21d   :  { %340 = vst.msk [vmem:[#allocation2 + $0x20] sm:$0xff] %vm335_vm14, %v321_v58  ;;  %v332_v60 = vadd.f32 %v1315_v59, %v1200_v46 }
 0x21e   :  { %v323_v61 = vpop.f32.mrf.mxu1 }
 0x21f   :  { %343 = vst.msk [vmem:[#allocation2 + $0x38] sm:$0xff] %vm335_vm14, %v332_v60  ;;  %v324_v0 = vadd.f32 %v1200_v46, %v323_v61  ;;  %v606_v61 = vsel %vm605_vm3, 1, %v1491_v2 }
 0x220   :  { %v400_v1 = vpop.f32.mrf.mxu1  ;;  %v448_v37 = vld [vmem:[#allocation2 + $0x8] sm:$0xff] }
 0x221   :  { %341 = vst.msk [vmem:[#allocation2 + $0x28] sm:$0xff] %vm335_vm14, %v324_v0  ;;  %v421_v3 = vadd.f32 %v1662_v62, %v400_v1  ;;  %v406_v9 = vadd.f32 %v400_v1, %v350_v8  ;;  %v530_v1 = vld [vmem:[#allocation2 + $0x10] sm:$0xff] }
 0x222   :  { %v1322_v4 = vpop.f32.mrf.mxu1 }
 0x223   :  { %423 = vrot.lane.b32.xlu1 %v421_v3, %s1495_s18  ;;  %v1209_v10 = vmul.f32 -1.442695, %v406_v9 }
 0x224   :  { %v403_v5 = vpop.f32.mrf.mxu1 }
 0x225   :  { %1421 = vpow2.f32 %v1209_v10 }
 0x226   :  { %v1323_v7 = vpop.f32.mrf.mxu1 }
 0x227   :  { %444 = vperm.xlu1 %1404, %v442_v6  }
 0x232   :  { %v1422_v11 = vpop.eup %1421 }
 0x233   :  { %v410_v12 = vadd.f32 1.0, %v1422_v11 }
 0x235   :  { %1423 = vrcp.f32 %v410_v12 }
 0x242   :  { %v1424_v13 = vpop.eup %1423 }
 0x243   :  { %v433_v19 = vsub.f32 1.0, %v1424_v13  ;;  %v439_v22 = vmul.f32 0.0, %v1424_v13 }
 0x295   :  { %v424_v14 = vpop.permute.xlu1 %423 }
 0x296   :  { %v426_v15 = vmul.f32 %v1424_v13, %v424_v14 }
 0x298   :  { %428 = vrot.lane.b32.xlu0 %v426_v15, %s1495_s18 }
 0x2a2   :  { %v445_v21 = vpop.permute.xlu1 %444 }
 0x2a3   :  { %vm446_vm0 = vcmp.eq.s32.totalorder %v445_v21, 1 }
 0x30a   :  { %v429_v16 = vpop.permute.xlu0 %428 }
 0x30b   :  { %v431_v17 = vadd.f32 %v429_v16, %v350_v8 }
 0x30d   :  { %1425 = vtanh.f32 %v431_v17 }
 0x31a   :  { %v1426_v18 = vpop.eup %1425 }
 0x31b   :  { %435 = vrot.lane.b32.xlu0 %v1426_v18, %s1496_s1 }
 0x38d   :  { %v436_v20 = vpop.permute.xlu0 %435 }
 0x38e   :  { %v438_v23 = vmul.f32 %v436_v20, %v433_v19 }
 0x390   :  { %v440_v24 = vadd.f32 %v439_v22, %v438_v23 }
 0x392   :  { %v447_v25 = vsel %vm446_vm0, %v440_v24, 0.0 }
 0x393   :  { %v449_v26 = vpack.c.bf16 %v447_v25, %v447_v25 }
 0x395   :  { %451 = vrot.lane.b32.xlu1 %v449_v26, %s1496_s1  ;;  %v688_v26 = vsel %vm687_vm5, 1, %v1491_v2 }
 0x407   :  { %v452_v27 = vpop.permute.xlu1 %451 }
 0x408   :  { %1329 = vmatmul.mubr.msk.bf16.vlgmr.msra.gmra.mxu1 %vm257_vm13, %v452_v27 }
 0x409   :  { %1333 = vmatpush3.bf16.msra.mxu1 %v1618_v31  ;;  %1336 = vmatprep.mubr.msk.bf16.mxu1 %vm1494_vm12, %v1493_v30 }
 0x40a   :  { %1334 = vmatprep.subr.bf16.mxu1 %v1493_v30 }
 0x40d   :  { %1335 = vmatpush3.bf16.msra.mxu1 %v1626_v32 }
 0x40e   :  { %1348 = vmatprep.subr.bf16.mxu1 %v1493_v30 }
 0x4c8   :  { %v490_v28 = vpop.f32.mrf.mxu1 }
 0x4c9   :  { %v503_v29 = vadd.f32 %v490_v28, %v1662_v62  ;;  %v496_v38 = vadd.f32 %v490_v28, %v448_v37  ;;  %v612_v28 = vld [vmem:[#allocation2 + $0x18] sm:$0xff] }
 0x4ca   :  { %v1330_v33 = vpop.f32.mrf.mxu1 }
 0x4cb   :  { %505 = vrot.lane.b32.xlu0 %v503_v29, %s1495_s18  ;;  %v1212_v39 = vmul.f32 -1.442695, %v496_v38 }
 0x4cc   :  { %v493_v34 = vpop.f32.mrf.mxu1 }
 0x4cd   :  { %1427 = vpow2.f32 %v1212_v39 }
 0x4ce   :  { %v1331_v36 = vpop.f32.mrf.mxu1 }
 0x4cf   :  { %526 = vperm.xlu0 %1403, %v524_v35  }
 0x4da   :  { %v1428_v40 = vpop.eup %1427 }
 0x4db   :  { %v500_v41 = vadd.f32 1.0, %v1428_v40 }
 0x4dd   :  { %1429 = vrcp.f32 %v500_v41 }
 0x4ea   :  { %v1430_v42 = vpop.eup %1429 }
 0x4eb   :  { %v515_v48 = vsub.f32 1.0, %v1430_v42  ;;  %v521_v51 = vmul.f32 %v1430_v42, %v447_v25 }
 0x53d   :  { %v506_v43 = vpop.permute.xlu0 %505 }
 0x53e   :  { %v508_v44 = vmul.f32 %v1430_v42, %v506_v43 }
 0x540   :  { %510 = vrot.lane.b32.xlu1 %v508_v44, %s1495_s18 }
 0x54a   :  { %v527_v50 = vpop.permute.xlu0 %526 }
 0x54b   :  { %vm528_vm2 = vcmp.eq.s32.totalorder %v527_v50, 1 }
 0x5b2   :  { %v511_v45 = vpop.permute.xlu1 %510 }
 0x5b3   :  { %v513_v46 = vadd.f32 %v511_v45, %v448_v37 }
 0x5b5   :  { %1431 = vtanh.f32 %v513_v46 }
 0x5c2   :  { %v1432_v47 = vpop.eup %1431 }
 0x5c3   :  { %517 = vrot.lane.b32.xlu1 %v1432_v47, %s1496_s1 }
 0x635   :  { %v518_v49 = vpop.permute.xlu1 %517 }
 0x636   :  { %v520_v52 = vmul.f32 %v518_v49, %v515_v48 }
 0x638   :  { %v522_v53 = vadd.f32 %v521_v51, %v520_v52 }
 0x63a   :  { %v529_v54 = vsel %vm528_vm2, %v522_v53, %v447_v25 }
 0x63b   :  { %v531_v55 = vpack.c.bf16 %v529_v54, %v529_v54 }
 0x63d   :  { %533 = vrot.lane.b32.xlu0 %v531_v55, %s1496_s1  ;;  %v770_v55 = vsel %vm769_vm7, 1, %v1491_v2 }
 0x6af   :  { %v534_v56 = vpop.permute.xlu0 %533 }
 0x6b0   :  { %1337 = vmatmul.mubr.msk.bf16.vlgmr.msra.gmra.mxu1 %vm257_vm13, %v534_v56 }
 0x6b1   :  { %1349 = vmatpush3.bf16.msra.mxu1 %v1618_v31  ;;  %1352 = vmatprep.mubr.msk.bf16.mxu1 %vm1494_vm12, %v1493_v30 }
 0x6b2   :  { %1350 = vmatprep.subr.bf16.mxu1 %v1493_v30 }
 0x6b5   :  { %1351 = vmatpush3.bf16.msra.mxu1 %v1626_v32 }
 0x6b6   :  { %1364 = vmatprep.subr.bf16.mxu1 %v1493_v30 }
 0x770   :  { %v572_v57 = vpop.f32.mrf.mxu1 }
 0x771   :  { %v585_v58 = vadd.f32 %v572_v57, %v1662_v62  ;;  %v578_v3 = vadd.f32 %v572_v57, %v530_v1  ;;  %v694_v57 = vld [vmem:[#allocation2 + $0x20] sm:$0xff] }
 0x772   :  { %v1338_v59 = vpop.f32.mrf.mxu1 }
 0x773   :  { %587 = vrot.lane.b32.xlu1 %v585_v58, %s1495_s18  ;;  %v1214_v4 = vmul.f32 -1.442695, %v578_v3 }
 0x774   :  { %v575_v60 = vpop.f32.mrf.mxu1 }
 0x775   :  { %1433 = vpow2.f32 %v1214_v4 }
 0x776   :  { %v1339_v0 = vpop.f32.mrf.mxu1 }
 0x777   :  { %608 = vperm.xlu1 %1404, %v606_v61  }
 0x782   :  { %v1434_v5 = vpop.eup %1433 }
 0x783   :  { %v582_v6 = vadd.f32 1.0, %v1434_v5 }
 0x785   :  { %1435 = vrcp.f32 %v582_v6 }
 0x792   :  { %v1436_v7 = vpop.eup %1435 }
 0x793   :  { %v597_v13 = vsub.f32 1.0, %v1436_v7  ;;  %v603_v16 = vmul.f32 %v1436_v7, %v529_v54 }
 0x7e5   :  { %v588_v8 = vpop.permute.xlu1 %587 }
 0x7e6   :  { %v590_v9 = vmul.f32 %v1436_v7, %v588_v8 }
 0x7e8   :  { %592 = vrot.lane.b32.xlu0 %v590_v9, %s1495_s18 }
 0x7f2   :  { %v609_v15 = vpop.permute.xlu1 %608 }
 0x7f3   :  { %vm610_vm4 = vcmp.eq.s32.totalorder %v609_v15, 1 }
 0x85a   :  { %v593_v10 = vpop.permute.xlu0 %592 }
 0x85b   :  { %v595_v11 = vadd.f32 %v593_v10, %v530_v1 }
 0x85d   :  { %1437 = vtanh.f32 %v595_v11 }
 0x86a   :  { %v1438_v12 = vpop.eup %1437 }
 0x86b   :  { %599 = vrot.lane.b32.xlu0 %v1438_v12, %s1496_s1 }
 0x8dd   :  { %v600_v14 = vpop.permute.xlu0 %599 }
 0x8de   :  { %v602_v17 = vmul.f32 %v600_v14, %v597_v13 }
 0x8e0   :  { %v604_v18 = vadd.f32 %v603_v16, %v602_v17 }
 0x8e2   :  { %v611_v19 = vsel %vm610_vm4, %v604_v18, %v529_v54 }
 0x8e3   :  { %v613_v20 = vpack.c.bf16 %v611_v19, %v611_v19 }
 0x8e5   :  { %615 = vrot.lane.b32.xlu1 %v613_v20, %s1496_s1 }
 0x957   :  { %v616_v21 = vpop.permute.xlu1 %615 }
 0x958   :  { %1345 = vmatmul.mubr.msk.bf16.vlgmr.msra.gmra.mxu0 %vm257_vm13, %v616_v21  ;;  %v776_v21 = vld [vmem:[#allocation2 + $0x28] sm:$0xff] }
 0x959   :  { %1357 = vmatpush3.bf16.msra.mxu0 %v1618_v31  ;;  %1360 = vmatprep.mubr.msk.bf16.mxu0 %vm1494_vm12, %v1493_v30 }
 0x95a   :  { %1358 = vmatprep.subr.bf16.mxu0 %v1493_v30 }
 0x95d   :  { %1359 = vmatpush3.bf16.msra.mxu0 %v1626_v32 }
 0x95e   :  { %1372 = vmatprep.subr.bf16.mxu0 %v1493_v30 }
 0xa18   :  { %v654_v22 = vpop.f32.mrf.mxu0 }
 0xa19   :  { %v667_v23 = vadd.f32 %v654_v22, %v1662_v62  ;;  %v660_v29 = vadd.f32 %v654_v22, %v612_v28 }
 0xa1a   :  { %v1346_v24 = vpop.f32.mrf.mxu0 }
 0xa1b   :  { %669 = vrot.lane.b32.xlu0 %v667_v23, %s1495_s18  ;;  %v1216_v33 = vmul.f32 -1.442695, %v660_v29 }
 0xa1c   :  { %v657_v25 = vpop.f32.mrf.mxu0 }
 0xa1d   :  { %1439 = vpow2.f32 %v1216_v33 }
 0xa1e   :  { %v1347_v27 = vpop.f32.mrf.mxu0 }
 0xa1f   :  { %690 = vperm.xlu0 %1403, %v688_v26  }
 0xa2a   :  { %v1440_v34 = vpop.eup %1439 }
 0xa2b   :  { %v664_v35 = vadd.f32 1.0, %v1440_v34 }
 0xa2d   :  { %1441 = vrcp.f32 %v664_v35 }
 0xa3a   :  { %v1442_v36 = vpop.eup %1441 }
 0xa3b   :  { %v679_v42 = vsub.f32 1.0, %v1442_v36  ;;  %v685_v45 = vmul.f32 %v1442_v36, %v611_v19 }
 0xa8d   :  { %v670_v37 = vpop.permute.xlu0 %669 }
 0xa8e   :  { %v672_v38 = vmul.f32 %v1442_v36, %v670_v37 }
 0xa90   :  { %674 = vrot.lane.b32.xlu1 %v672_v38, %s1495_s18 }
 0xa9a   :  { %v691_v44 = vpop.permute.xlu0 %690 }
 0xa9b   :  { %vm692_vm6 = vcmp.eq.s32.totalorder %v691_v44, 1 }
 0xb02   :  { %v675_v39 = vpop.permute.xlu1 %674 }
 0xb03   :  { %v677_v40 = vadd.f32 %v675_v39, %v612_v28 }
 0xb05   :  { %1443 = vtanh.f32 %v677_v40 }
 0xb12   :  { %v1444_v41 = vpop.eup %1443 }
 0xb13   :  { %681 = vrot.lane.b32.xlu1 %v1444_v41, %s1496_s1 }
 0xb85   :  { %v682_v43 = vpop.permute.xlu1 %681 }
 0xb86   :  { %v684_v46 = vmul.f32 %v682_v43, %v679_v42 }
 0xb88   :  { %v686_v47 = vadd.f32 %v685_v45, %v684_v46 }
 0xb8a   :  { %v693_v48 = vsel %vm692_vm6, %v686_v47, %v611_v19  ;;  %v934_v47 = vsel %vm933_vm11, 1, %v1491_v2 }
 0xb8b   :  { %v695_v49 = vpack.c.bf16 %v693_v48, %v693_v48 }
 0xb8d   :  { %697 = vrot.lane.b32.xlu0 %v695_v49, %s1496_s1  ;;  %v858_v49 = vld [vmem:[#allocation2 + $0x30] sm:$0xff] }
 0xbff   :  { %v698_v50 = vpop.permute.xlu0 %697 }
 0xc00   :  { %1353 = vmatmul.mubr.msk.bf16.vlgmr.msra.gmra.mxu1 %vm257_vm13, %v698_v50 }
 0xc01   :  { %1365 = vmatpush3.bf16.msra.mxu1 %v1618_v31  ;;  %1368 = vmatprep.mubr.msk.bf16.mxu1 %vm1494_vm12, %v1493_v30 }
 0xc02   :  { %1366 = vmatprep.subr.bf16.mxu1 %v1493_v30 }
 0xc05   :  { %1367 = vmatpush3.bf16.msra.mxu1 %v1626_v32 }
 0xc06   :  { %1380 = vmatprep.subr.bf16.mxu1 %v1493_v30 }
 0xcc0   :  { %v736_v51 = vpop.f32.mrf.mxu1 }
 0xcc1   :  { %v749_v52 = vadd.f32 %v736_v51, %v1662_v62  ;;  %v742_v58 = vadd.f32 %v736_v51, %v694_v57 }
 0xcc2   :  { %v1354_v53 = vpop.f32.mrf.mxu1 }
 0xcc3   :  { %751 = vrot.lane.b32.xlu1 %v749_v52, %s1495_s18  ;;  %v1218_v59 = vmul.f32 -1.442695, %v742_v58 }
 0xcc4   :  { %v739_v54 = vpop.f32.mrf.mxu1 }
 0xcc5   :  { %1445 = vpow2.f32 %v1218_v59 }
 0xcc6   :  { %v1355_v56 = vpop.f32.mrf.mxu1 }
 0xcc7   :  { %772 = vperm.xlu1 %1404, %v770_v55  }
 0xcd2   :  { %v1446_v60 = vpop.eup %1445 }
 0xcd3   :  { %v746_v61 = vadd.f32 1.0, %v1446_v60 }
 0xcd5   :  { %1447 = vrcp.f32 %v746_v61 }
 0xce2   :  { %v1448_v0 = vpop.eup %1447 }
 0xce3   :  { %v761_v7 = vsub.f32 1.0, %v1448_v0  ;;  %v767_v10 = vmul.f32 %v1448_v0, %v693_v48 }
 0xd35   :  { %v752_v1 = vpop.permute.xlu1 %751 }
 0xd36   :  { %v754_v3 = vmul.f32 %v1448_v0, %v752_v1 }
 0xd38   :  { %756 = vrot.lane.b32.xlu0 %v754_v3, %s1495_s18 }
 0xd42   :  { %v773_v9 = vpop.permute.xlu1 %772 }
 0xd43   :  { %vm774_vm8 = vcmp.eq.s32.totalorder %v773_v9, 1 }
 0xdaa   :  { %v757_v4 = vpop.permute.xlu0 %756 }
 0xdab   :  { %v759_v5 = vadd.f32 %v757_v4, %v694_v57 }
 0xdad   :  { %1449 = vtanh.f32 %v759_v5 }
 0xdba   :  { %v1450_v6 = vpop.eup %1449 }
 0xdbb   :  { %763 = vrot.lane.b32.xlu0 %v1450_v6, %s1496_s1 }
 0xe2d   :  { %v764_v8 = vpop.permute.xlu0 %763 }
 0xe2e   :  { %v766_v11 = vmul.f32 %v764_v8, %v761_v7 }
 0xe30   :  { %v768_v12 = vadd.f32 %v767_v10, %v766_v11 }
 0xe32   :  { %v775_v13 = vsel %vm774_vm8, %v768_v12, %v693_v48  ;;  %v1016_v12 = vsel %vm1015_vm15, 1, %v1491_v2 }
 0xe33   :  { %v777_v14 = vpack.c.bf16 %v775_v13, %v775_v13 }
 0xe35   :  { %779 = vrot.lane.b32.xlu1 %v777_v14, %s1496_s1  ;;  %v940_v14 = vld [vmem:[#allocation2 + $0x38] sm:$0xff] }
 0xea7   :  { %v780_v15 = vpop.permute.xlu1 %779 }
 0xea8   :  { %1361 = vmatmul.mubr.msk.bf16.vlgmr.msra.gmra.mxu0 %vm257_vm13, %v780_v15 }
 0xea9   :  { %1373 = vmatpush3.bf16.msra.mxu0 %v1618_v31  ;;  %1376 = vmatprep.mubr.msk.bf16.mxu0 %vm1494_vm12, %v1493_v30  ;;  %v852_v31 = vsel %vm851_vm9, 1, %v1491_v2  ;;  %v1417_v2 = vld [vmem:[%s1803_s8 + $0x8] sm:$0xff]  }
 0xeaa   :  { %1374 = vmatprep.subr.bf16.mxu0 %v1493_v30 }
 0xead   :  { %1375 = vmatpush3.bf16.msra.mxu0 %v1626_v32 }
 0xeae   :  { %1388 = vmatprep.subr.bf16.mxu0 %v1493_v30 }
 0xf68   :  { %v818_v16 = vpop.f32.mrf.mxu0 }
 0xf69   :  { %v831_v17 = vadd.f32 %v818_v16, %v1662_v62  ;;  %v824_v22 = vadd.f32 %v818_v16, %v776_v21 }
 0xf6a   :  { %v1362_v18 = vpop.f32.mrf.mxu0 }
 0xf6b   :  { %833 = vrot.lane.b32.xlu0 %v831_v17, %s1495_s18  ;;  %v1220_v23 = vmul.f32 -1.442695, %v824_v22 }
 0xf6c   :  { %v821_v19 = vpop.f32.mrf.mxu0 }
 0xf6d   :  { %1451 = vpow2.f32 %v1220_v23  ;;  %v1419_v23 = vld [vmem:[%s1798_s3 + $0x8] sm:$0xff]  }
 0xf6e   :  { %v1363_v20 = vpop.f32.mrf.mxu0 }
 0xf6f   :  { %854 = vperm.xlu0 %1403, %v852_v31  }
 0xf7a   :  { %v1452_v32 = vpop.eup %1451 }
 0xf7b   :  { %v828_v24 = vadd.f32 1.0, %v1452_v32 }
 0xf7d   :  { %1453 = vrcp.f32 %v828_v24 }
 0xf8a   :  { %v1454_v25 = vpop.eup %1453 }
 0xf8b   :  { %v843_v34 = vsub.f32 1.0, %v1454_v25  ;;  %v849_v37 = vmul.f32 %v1454_v25, %v775_v13 }
 0xfdd   :  { %v834_v26 = vpop.permute.xlu0 %833 }
 0xfde   :  { %v836_v27 = vmul.f32 %v1454_v25, %v834_v26 }
 0xfe0   :  { %838 = vrot.lane.b32.xlu1 %v836_v27, %s1495_s18 }
 0xfea   :  { %v855_v36 = vpop.permute.xlu0 %854 }
 0xfeb   :  { %vm856_vm10 = vcmp.eq.s32.totalorder %v855_v36, 1  ;;  %v1225_v36 = vld [vmem:[%s1804_s9] ss:$0 sm:$0xff] }
0x1052   :  { %v839_v28 = vpop.permute.xlu1 %838 }
0x1053   :  { %v841_v29 = vadd.f32 %v839_v28, %v776_v21  ;;  %v1418_v21 = vld [vmem:[%s1803_s8] sm:$0xff]  }
0x1055   :  { %1455 = vtanh.f32 %v841_v29 }
0x1062   :  { %v1456_v33 = vpop.eup %1455 }
0x1063   :  { %845 = vrot.lane.b32.xlu1 %v1456_v33, %s1496_s1 }
0x10d5   :  { %v846_v35 = vpop.permute.xlu1 %845 }
0x10d6   :  { %v848_v38 = vmul.f32 %v846_v35, %v843_v34 }
0x10d8   :  { %v850_v39 = vadd.f32 %v849_v37, %v848_v38 }
0x10da   :  { %v857_v40 = vsel %vm856_vm10, %v850_v39, %v775_v13 }
0x10db   :  { %v859_v41 = vpack.c.bf16 %v857_v40, %v857_v40 }
0x10dd   :  { %861 = vrot.lane.b32.xlu0 %v859_v41, %s1496_s1 }
0x114f   :  { %v862_v42 = vpop.permute.xlu0 %861 }
0x1150   :  { %1369 = vmatmul.mubr.msk.bf16.vlgmr.msra.gmra.mxu1 %vm257_vm13, %v862_v42 }
0x1151   :  { %1384 = vmatprep.mubr.msk.bf16.mxu1 %vm1494_vm12, %v1493_v30  ;;  %1381 = vmatpush3.bf16.msra.mxu1 %v1417_v2 }
0x1152   :  { %1382 = vmatprep.subr.bf16.mxu1 %v1493_v30 }
0x1155   :  { %1383 = vmatpush3.bf16.msra.mxu1 %v1418_v21 }
0x1210   :  { %v900_v43 = vpop.f32.mrf.mxu1 }
0x1211   :  { %v913_v44 = vadd.f32 %v900_v43, %v1662_v62  ;;  %v906_v50 = vadd.f32 %v900_v43, %v858_v49 }
0x1212   :  { %v1370_v45 = vpop.f32.mrf.mxu1 }
0x1213   :  { %915 = vrot.lane.b32.xlu1 %v913_v44, %s1495_s18  ;;  %v1222_v51 = vmul.f32 -1.442695, %v906_v50 }
0x1214   :  { %v903_v46 = vpop.f32.mrf.mxu1 }
0x1215   :  { %1457 = vpow2.f32 %v1222_v51 }
0x1216   :  { %v1371_v48 = vpop.f32.mrf.mxu1 }
0x1217   :  { %936 = vperm.xlu1 %1404, %v934_v47  }
0x1222   :  { %v1458_v52 = vpop.eup %1457 }
0x1223   :  { %v910_v53 = vadd.f32 1.0, %v1458_v52 }
0x1225   :  { %1459 = vrcp.f32 %v910_v53 }
0x1232   :  { %v1460_v54 = vpop.eup %1459 }
0x1233   :  { %v925_v60 = vsub.f32 1.0, %v1460_v54  ;;  %v931_v1 = vmul.f32 %v1460_v54, %v857_v40 }
0x1285   :  { %v916_v55 = vpop.permute.xlu1 %915 }
0x1286   :  { %v918_v56 = vmul.f32 %v1460_v54, %v916_v55 }
0x1288   :  { %920 = vrot.lane.b32.xlu0 %v918_v56, %s1495_s18 }
0x1292   :  { %v937_v0 = vpop.permute.xlu1 %936 }
0x1293   :  { %vm938_vm14 = vcmp.eq.s32.totalorder %v937_v0, 1 }
0x12fa   :  { %v921_v57 = vpop.permute.xlu0 %920 }
0x12fb   :  { %v923_v58 = vadd.f32 %v921_v57, %v858_v49 }
0x12fd   :  { %1461 = vtanh.f32 %v923_v58 }
0x130a   :  { %v1462_v59 = vpop.eup %1461 }
0x130b   :  { %927 = vrot.lane.b32.xlu0 %v1462_v59, %s1496_s1 }
0x137d   :  { %v928_v61 = vpop.permute.xlu0 %927 }
0x137e   :  { %v930_v3 = vmul.f32 %v928_v61, %v925_v60 }
0x1380   :  { %v932_v4 = vadd.f32 %v931_v1, %v930_v3 }
0x1382   :  { %v939_v5 = vsel %vm938_vm14, %v932_v4, %v857_v40 }
0x1383   :  { %v941_v6 = vpack.c.bf16 %v939_v5, %v939_v5 }
0x1385   :  { %943 = vrot.lane.b32.xlu1 %v941_v6, %s1496_s1 }
0x13f7   :  { %v944_v7 = vpop.permute.xlu1 %943 }
0x13f8   :  { %1377 = vmatmul.mubr.msk.bf16.vlgmr.msra.gmra.mxu0 %vm257_vm13, %v944_v7 }
0x13f9   :  { %1392 = vmatprep.mubr.msk.bf16.mxu0 %vm1494_vm12, %v1493_v30  ;;  %1389 = vmatpush3.bf16.msra.mxu0 %v1419_v23 }
0x13fa   :  { %1390 = vmatprep.subr.bf16.mxu0 %v1493_v30  ;;  %v1420_v30 = vld [vmem:[%s1798_s3] sm:$0xff]  }
0x13fd   :  { %1391 = vmatpush3.bf16.msra.mxu0 %v1420_v30 }
0x14b8   :  { %v982_v8 = vpop.f32.mrf.mxu0 }
0x14b9   :  { %v995_v9 = vadd.f32 %v982_v8, %v1662_v62  ;;  %v988_v15 = vadd.f32 %v982_v8, %v940_v14 }
0x14ba   :  { %v1378_v10 = vpop.f32.mrf.mxu0 }
0x14bb   :  { %997 = vrot.lane.b32.xlu0 %v995_v9, %s1495_s18  ;;  %v1224_v16 = vmul.f32 -1.442695, %v988_v15 }
0x14bc   :  { %v985_v11 = vpop.f32.mrf.mxu0 }
0x14bd   :  { %1463 = vpow2.f32 %v1224_v16 }
0x14be   :  { %v1379_v13 = vpop.f32.mrf.mxu0 }
0x14bf   :  { %1018 = vperm.xlu0 %1403, %v1016_v12  }
0x14ca   :  { %v1464_v17 = vpop.eup %1463 }
0x14cb   :  { %v992_v18 = vadd.f32 1.0, %v1464_v17 }
0x14cd   :  { %1465 = vrcp.f32 %v992_v18 }
0x14da   :  { %v1466_v19 = vpop.eup %1465 }
0x14db   :  { %v1007_v32 = vsub.f32 1.0, %v1466_v19  ;;  %v1013_v26 = vmul.f32 %v1466_v19, %v939_v5 }
0x152d   :  { %v998_v31 = vpop.permute.xlu0 %997 }
0x152e   :  { %v1000_v62 = vmul.f32 %v1466_v19, %v998_v31 }
0x1530   :  { %1002 = vrot.lane.b32.xlu1 %v1000_v62, %s1495_s18 }
0x153a   :  { %v1019_v25 = vpop.permute.xlu0 %1018 }
0x153b   :  { %vm1020_vm12 = vcmp.eq.s32.totalorder %v1019_v25, 1 }
0x15a2   :  { %v1003_v63 = vpop.permute.xlu1 %1002 }
0x15a3   :  { %v1005_v20 = vadd.f32 %v1003_v63, %v940_v14 }
0x15a5   :  { %1467 = vtanh.f32 %v1005_v20 }
0x15b2   :  { %v1468_v22 = vpop.eup %1467 }
0x15b3   :  { %1009 = vrot.lane.b32.xlu1 %v1468_v22, %s1496_s1 }
0x1625   :  { %v1010_v24 = vpop.permute.xlu1 %1009 }
0x1626   :  { %v1012_v27 = vmul.f32 %v1010_v24, %v1007_v32 }
0x1628   :  { %v1014_v28 = vadd.f32 %v1013_v26, %v1012_v27 }
0x162a   :  { %v1021_v29 = vsel %vm1020_vm12, %v1014_v28, %v939_v5 }
0x162b   :  { %1023 = vrot.lane.b32.xlu1 %v1021_v29, %s1496_s1  ;;  %v1027_v33 = vpack.c.bf16 %v1021_v29, %v1021_v29 }
0x162d   :  { %1040 = vrot.lane.b32.xlu0 %v1027_v33, %s1496_s1 }
0x169d   :  { %v1024_v34 = vpop.permute.xlu1 %1023 }
0x169e   :  { %1026 = vst.msk [vmem:[#allocation3] sm:$0xff] %vm257_vm13, %v1024_v34 }
0x169f   :  { %v1041_v35 = vpop.permute.xlu0 %1040 }
0x16a0   :  { %1385 = vmatmul.mubr.msk.bf16.vlgmr.msra.gmra.mxu1 %vm257_vm13, %v1041_v35 }
0x1760   :  { %v1091_v37 = vpop.f32.mrf.mxu1 }
0x1761   :  { %v1092_v38 = vadd.f32 %v1225_v36, %v1091_v37 }
0x1762   :  { %v1386_v39 = vpop.f32.mrf.mxu1 }
0x1763   :  { %v1097_v40 = vpack.c.bf16 %v1092_v38, %v1092_v38 }
0x1764   :  { %v1094_v41 = vpop.f32.mrf.mxu1 }
0x1765   :  { %1393 = vmatmul.mubr.msk.bf16.vlgmr.msra.gmra.mxu0 %vm257_vm13, %v1097_v40 }
0x1766   :  { %v1387_v42 = vpop.f32.mrf.mxu1 }
0x1767   :  { %1480 = shalt.err (!%p1477_p4)
}
0x1768   :  { %1169 = dma.vmem_to_hbm [thread:$0]  %s1167_s2, 128, %s1806_s11, [#allocation4]  }
0x1825   :  { %v1151_v43 = vpop.f32.mrf.mxu0 }
0x1826   :  { %1157 = vst [vmem:[%s1805_s10] sm:$0xff] %v1151_v43 }
0x1827   :  { %v1394_v44 = vpop.f32.mrf.mxu0 }
0x1829   :  { %v1154_v45 = vpop.f32.mrf.mxu0 }
0x182b   :  { %v1395_v46 = vpop.f32.mrf.mxu0 }
0x182c   :  { %1489 = dma.done.wait [#allocation4], 128  }
0x182d   :  { %1490 = vsyncadd [#allocation4], 4294967168 }
0x182e   :  { %1175 = vsyncpa [#allocation4], 1 }

</bundles_post_ra>
